<compile_context>
chip_gen: v6e
topology: v6e:2x2x1
jax: 0.10.0
libtpu: 0.0.40
codegen_flags: <defaults>
</compile_context>

<pallas_src>
import functools

import jax
import jax.numpy as jnp
from jax.experimental import pallas as pl
from jax.experimental.pallas import tpu as pltpu

BN_EPS = 1e-5
LANE = 128
SUBLANE = 8
VMEM_LIMIT = 32 * 1024 * 1024  # explicit scoped-VMEM limit; safe on v5e/v6e/v7x


def _round_up(x, m):
    return (x + m - 1) // m * m


def _conv_stats_kernel(x_ref, w_ref, conv_ref, sum_ref, ssq_ref, *, KH, KW, TH, WO):
    """Per row-slab tile: KxK conv as KH*KW shifted-slice MXU matmuls (f32 acc);
    writes the conv tile and its per-channel sum / sum-of-squares (BN pass 1)."""
    rt = conv_ref.shape[1]          # = TH * WO GEMM rows
    cp = conv_ref.shape[2]          # padded Cout (multiple of 128 -> dense lanes)
    x = x_ref[0]                    # (TH + KH - 1, WO + KW - 1, Cin_padded)

    acc = jnp.zeros((rt, cp), jnp.float32)
    for kh in range(KH):
        for kw in range(KW):
            patch = x[kh:kh + TH, kw:kw + WO, :]              # (TH, WO, Cinp)
            lhs = patch.reshape(rt, patch.shape[-1])          # (TH*WO, Cinp)
            acc = acc + jnp.dot(lhs, w_ref[kh * KW + kw],
                                preferred_element_type=jnp.float32)

    conv_ref[0] = acc.astype(conv_ref.dtype)
    # One-pass BN statistics: per-channel sum and sum-of-squares for this tile.
    sum_ref[0] = jnp.sum(acc, axis=0, keepdims=True)
    ssq_ref[0] = jnp.sum(acc * acc, axis=0, keepdims=True)


def _bn_relu_kernel(conv_ref, scale_ref, shift_ref, o_ref):
    """Fused BatchNorm affine (pre-folded per-channel scale/shift) + ReLU."""
    y = conv_ref[0] * scale_ref[...] + shift_ref[...]
    o_ref[0] = jnp.maximum(y, 0.0).astype(o_ref.dtype)


def _choose_row_tile(ho, wo, halo_h, wp, cinp, coutp, in_bytes,
                     target_rows=1024, vmem_budget=12 * 1024 * 1024):
    """Largest H-tile that divides Ho, keeps <= target_rows GEMM rows/step, and
    keeps the double-buffered block footprint within a conservative VMEM budget
    (sized so the same tiling is safe on v7x's 64 MiB VMEM; v5e/v6e have more)."""
    best = 1
    for th in range(1, ho + 1):
        if ho % th:
            continue
        rows = th * wo
        slab_bytes = (th + halo_h) * wp * cinp * in_bytes
        conv_bytes = rows * coutp * 4
        footprint = 2 * slab_bytes + 3 * conv_bytes   # dbuf input + dbuf output + acc
        if rows <= target_rows and footprint <= vmem_budget:
            best = max(best, th)
    return best


def convx_forward(x_nchw, weight, gamma, beta, stride=1, *,
                  mxu_dtype=jnp.bfloat16, row_tile_h=None):
    """ConvX forward. x_nchw: (N,Cin,H,W); weight: (Cout,Cin,KH,KW) -> (N,Cout,Ho,Wo)."""
    N, Cin, H, W = x_nchw.shape
    Cout, Cin_w, KH, KW = weight.shape
    assert Cin_w == Cin
    # TODO(synk): only stride=1 is lowered by the shifted-slice conv kernel;
    # stride>1 would need strided window slices (or per-tile im2col).
    assert stride == 1, "Pallas ConvX kernel currently supports stride=1 only"
    pad = KH // 2                       # matches nn.Conv2d(padding=kernel // 2)

    Ho = (H + 2 * pad - KH) // stride + 1
    Wo = (W + 2 * pad - KW) // stride + 1
    Wp = W + 2 * pad
    halo_h = KH - 1

    Cinp = _round_up(Cin, SUBLANE)       # pad contraction channels to sublane multiple
    Coutp = _round_up(Cout, LANE)        # pad output channels -> lane-dense MXU/stores

    in_dtype = jnp.dtype(mxu_dtype) if mxu_dtype is not None else jnp.dtype(x_nchw.dtype)
    in_bytes = in_dtype.itemsize

    # ---- glue (XLA): NCHW -> NHWC, zero-pad spatial + channel dims ----
    x = jnp.transpose(x_nchw, (0, 2, 3, 1))                        # (N, H, W, Cin)
    x = jnp.pad(x, ((0, 0), (pad, pad), (pad, pad), (0, Cinp - Cin)))

    # ---- H-tiling (GEMM rows per grid step = TH * Wo) ----
    if row_tile_h is None:
        TH = _choose_row_tile(Ho, Wo, halo_h, Wp, Cinp, Coutp, in_bytes)
    else:
        TH = row_tile_h
        assert Ho % TH == 0
    HT = Ho // TH
    T = N * HT                   # grid steps
    RT = TH * Wo                 # GEMM rows per step
    Hs = TH + halo_h             # slab rows per step (with conv halo)

    # Overlapping row slabs: only (KH-1) halo rows are duplicated per tile,
    # instead of materializing a KH*KW-inflated im2col matrix in HBM.
    slabs = jnp.stack([x[:, ht * TH: ht * TH + Hs, :, :] for ht in range(HT)], axis=1)
    slabs = slabs.reshape(T, Hs, Wp, Cinp).astype(in_dtype)

    # Weights: (Cout, Cin, KH, KW) -> (KH*KW, Cinp, Coutp), zero-padded.
    w = jnp.transpose(weight, (2, 3, 1, 0)).reshape(KH * KW, Cin, Cout)
    w = jnp.pad(w, ((0, 0), (0, Cinp - Cin), (0, Coutp - Cout))).astype(in_dtype)

    P = N * Ho * Wo
    compiler_params = pltpu.CompilerParams(
        dimension_semantics=("parallel",),      # independent row tiles (2 TCs on v7x)
        vmem_limit_bytes=VMEM_LIMIT)

    # ---- pass 1: tiled conv GEMM + one-pass BN partial statistics ----
    flops1 = 2 * P * (KH * KW * Cinp) * Coutp
    bytes1 = (slabs.size * in_bytes + T * w.size * in_bytes
              + T * RT * Coutp * 4 + 2 * T * Coutp * 4)
    conv_out, part_sum, part_ssq = pl.pallas_call(
        functools.partial(_conv_stats_kernel, KH=KH, KW=KW, TH=TH, WO=Wo),
        grid=(T,),
        in_specs=[
            pl.BlockSpec((1, Hs, Wp, Cinp), lambda t: (t, 0, 0, 0)),
            pl.BlockSpec((KH * KW, Cinp, Coutp), lambda t: (0, 0, 0)),
        ],
        out_specs=(
            pl.BlockSpec((1, RT, Coutp), lambda t: (t, 0, 0)),
            pl.BlockSpec((1, 1, Coutp), lambda t: (t, 0, 0)),
            pl.BlockSpec((1, 1, Coutp), lambda t: (t, 0, 0)),
        ),
        out_shape=(
            jax.ShapeDtypeStruct((T, RT, Coutp), jnp.float32),
            jax.ShapeDtypeStruct((T, 1, Coutp), jnp.float32),
            jax.ShapeDtypeStruct((T, 1, Coutp), jnp.float32),
        ),
        compiler_params=compiler_params,
        cost_estimate=pl.CostEstimate(flops=flops1, transcendentals=0,
                                      bytes_accessed=bytes1),
    )(slabs, w)

    # ---- tiny finalize (XLA, O(Coutp)): global batch stats -> folded scale/shift ----
    # Note: E[x^2]-E[x]^2 in f32; clamp tiny negative variance from cancellation.
    s = jnp.sum(part_sum, axis=0).reshape(Coutp)
    sq = jnp.sum(part_ssq, axis=0).reshape(Coutp)
    mean = s / P
    var = jnp.maximum(sq / P - mean * mean, 0.0)         # biased batch var (train-mode BN)
    gamma_p = jnp.pad(gamma.astype(jnp.float32).reshape(-1), (0, Coutp - Cout))
    beta_p = jnp.pad(beta.astype(jnp.float32).reshape(-1), (0, Coutp - Cout))
    scale1 = gamma_p * jax.lax.rsqrt(var + BN_EPS)
    shift1 = beta_p - mean * scale1
    scale = scale1.reshape(1, Coutp)
    shift = shift1.reshape(1, Coutp)

    # ---- pass 2: tiled, fused normalize (scale/shift) + ReLU ----
    flops2 = 2 * P * Coutp
    bytes2 = 2 * T * RT * Coutp * 4 + 2 * Coutp * 4
    y = pl.pallas_call(
        _bn_relu_kernel,
        grid=(T,),
        in_specs=[
            pl.BlockSpec((1, RT, Coutp), lambda t: (t, 0, 0)),
            pl.BlockSpec((1, Coutp), lambda t: (0, 0)),
            pl.BlockSpec((1, Coutp), lambda t: (0, 0)),
        ],
        out_specs=pl.BlockSpec((1, RT, Coutp), lambda t: (t, 0, 0)),
        out_shape=jax.ShapeDtypeStruct((T, RT, Coutp), x_nchw.dtype),
        compiler_params=compiler_params,
        cost_estimate=pl.CostEstimate(flops=flops2, transcendentals=0,
                                      bytes_accessed=bytes2),
    )(conv_out, scale, shift)

    # ---- glue (XLA): un-tile, drop channel padding, back to NCHW ----
    # TODO(synk): if the consumer accepts NHWC, return the NHWC slab directly and
    # skip this final HBM transpose.
    y = y.reshape(N, HT, TH, Wo, Coutp).reshape(N, Ho, Wo, Coutp)[..., :Cout]
    return jnp.transpose(y, (0, 3, 1, 2))


def convx_reference(x_nchw, weight, gamma, beta, stride=1):
    """Pure-JAX f32 reference of the same forward pass (for verification)."""
    pad = weight.shape[-1] // 2
    conv = jax.lax.conv_general_dilated(
        x_nchw.astype(jnp.float32), weight.astype(jnp.float32),
        window_strides=(stride, stride),
        padding=[(pad, pad), (pad, pad)],
        dimension_numbers=("NCHW", "OIHW", "NCHW"),
        precision=jax.lax.Precision.HIGHEST)
    mean = jnp.mean(conv, axis=(0, 2, 3), keepdims=True)
    var = jnp.mean((conv - mean) ** 2, axis=(0, 2, 3), keepdims=True)
    yn = (conv - mean) * jax.lax.rsqrt(var + BN_EPS)
    yn = yn * gamma.reshape(1, -1, 1, 1) + beta.reshape(1, -1, 1, 1)
    return jnp.maximum(yn, 0.0)


if __name__ == "__main__":
    # Small shapes consistent with the module: in_planes=4, out_planes=8,
    # kernel=3, stride=1, input (N=2, Cin=4, H=16, W=16).
    N, Cin, Cout, H, W, K = 2, 4, 8, 16, 16, 3

    key = jax.random.PRNGKey(0)
    kx, kw = jax.random.split(key)
    x = jax.random.normal(kx, (N, Cin, H, W), dtype=jnp.float32)
    weight = 0.1 * jax.random.normal(kw, (Cout, Cin, K, K), dtype=jnp.float32)
    gamma = jnp.ones((Cout,), dtype=jnp.float32)   # BatchNorm2d default weight
    beta = jnp.zeros((Cout,), dtype=jnp.float32)   # BatchNorm2d default bias

    ref = convx_reference(x, weight, gamma, beta, stride=1)

    # f32 MXU operands: tracks the f32 reference tightly.
    out_f32 = jax.block_until_ready(
        convx_forward(x, weight, gamma, beta, stride=1, mxu_dtype=jnp.float32))
    assert out_f32.shape == (N, Cout, H, W)
    assert jnp.allclose(out_f32, ref, atol=5e-3, rtol=5e-3), "f32 path mismatch vs reference"

    # bf16 MXU operands + f32 accumulation (perf path); looser tolerance from
    # bf16 operand rounding.
    out_bf16 = jax.block_until_ready(
        convx_forward(x, weight, gamma, beta, stride=1, mxu_dtype=jnp.bfloat16))
    assert out_bf16.shape == (N, Cout, H, W)
    assert jnp.allclose(out_bf16, ref, atol=5e-2, rtol=5e-2), "bf16 path mismatch vs reference"

    print("KERNEL_OK")
</pallas_src>

<mosaic_0001>
module attributes {stable_mosaic.version = 11 : i64} {
  func.func @_conv_stats_kernel(%arg0: i32, %arg1: memref<1x18x18x8xf32, #tpu.memory_space<vmem>>, %arg2: memref<9x8x128xf32, #tpu.memory_space<vmem>>, %arg3: memref<1x256x128xf32, #tpu.memory_space<vmem>>, %arg4: memref<1x1x128xf32, #tpu.memory_space<vmem>>, %arg5: memref<1x1x128xf32, #tpu.memory_space<vmem>>) attributes {dimension_semantics = [#tpu.dimension_semantics<parallel>], iteration_bounds = array<i64: 2>, scalar_prefetch = 0 : i64, scratch_operands = 0 : i64, tpu.core_type = #tpu.core_type<tc>, window_params = [{transform_indices = @transform_0, window_bounds = array<i64: 1, 18, 18, 8>}, {pipeline_mode = #tpu.pipeline_mode<synchronous>, transform_indices = @transform_1, window_bounds = array<i64: 9, 8, 128>}, {transform_indices = @transform_2, window_bounds = array<i64: 1, 256, 128>}, {transform_indices = @transform_3, window_bounds = array<i64: 1, 1, 128>}, {transform_indices = @transform_4, window_bounds = array<i64: 1, 1, 128>}]} {
    %c0 = arith.constant 0 : index
    %c0_0 = arith.constant 0 : index
    %c0_1 = arith.constant 0 : index
    %c0_2 = arith.constant 0 : index
    %0 = vector.load %arg1[%c0, %c0_0, %c0_1, %c0_2] : memref<1x18x18x8xf32, #tpu.memory_space<vmem>>, vector<1x18x18x8xf32>
    %1 = vector.shape_cast %0 : vector<1x18x18x8xf32> to vector<18x18x8xf32>
    %cst = arith.constant 0.000000e+00 : f32
    %2 = vector.broadcast %cst : f32 to vector<256x128xf32>
    %3 = vector.extract_strided_slice %1 {offsets = [0, 0, 0], sizes = [16, 16, 8], strides = [1, 1, 1]} : vector<18x18x8xf32> to vector<16x16x8xf32>
    %4 = vector.shape_cast %3 : vector<16x16x8xf32> to vector<256x8xf32>
    %c0_3 = arith.constant 0 : index
    %c0_4 = arith.constant 0 : index
    %c0_5 = arith.constant 0 : index
    %5 = vector.load %arg2[%c0_3, %c0_4, %c0_5] : memref<9x8x128xf32, #tpu.memory_space<vmem>>, vector<1x8x128xf32>
    %6 = vector.shape_cast %5 : vector<1x8x128xf32> to vector<8x128xf32>
    %cst_6 = arith.constant dense<0.000000e+00> : vector<256x128xf32>
    %7 = tpu.matmul %4, %6, %cst_6 {dimension_numbers = #tpu.dot_dimension_numbers<[1], [0], [0], [1], [0, 0, 1, 1], [], []>} : vector<256x8xf32>, vector<8x128xf32>, vector<256x128xf32> -> vector<256x128xf32>
    %8 = arith.addf %2, %7 : vector<256x128xf32>
    %9 = vector.extract_strided_slice %1 {offsets = [0, 1, 0], sizes = [16, 16, 8], strides = [1, 1, 1]} : vector<18x18x8xf32> to vector<16x16x8xf32>
    %10 = vector.shape_cast %9 : vector<16x16x8xf32> to vector<256x8xf32>
    %c1 = arith.constant 1 : index
    %c0_7 = arith.constant 0 : index
    %c0_8 = arith.constant 0 : index
    %11 = vector.load %arg2[%c1, %c0_7, %c0_8] : memref<9x8x128xf32, #tpu.memory_space<vmem>>, vector<1x8x128xf32>
    %12 = vector.shape_cast %11 : vector<1x8x128xf32> to vector<8x128xf32>
    %cst_9 = arith.constant dense<0.000000e+00> : vector<256x128xf32>
    %13 = tpu.matmul %10, %12, %cst_9 {dimension_numbers = #tpu.dot_dimension_numbers<[1], [0], [0], [1], [0, 0, 1, 1], [], []>} : vector<256x8xf32>, vector<8x128xf32>, vector<256x128xf32> -> vector<256x128xf32>
    %14 = arith.addf %8, %13 : vector<256x128xf32>
    %15 = vector.extract_strided_slice %1 {offsets = [0, 2, 0], sizes = [16, 16, 8], strides = [1, 1, 1]} : vector<18x18x8xf32> to vector<16x16x8xf32>
    %16 = vector.shape_cast %15 : vector<16x16x8xf32> to vector<256x8xf32>
    %c2 = arith.constant 2 : index
    %c0_10 = arith.constant 0 : index
    %c0_11 = arith.constant 0 : index
    %17 = vector.load %arg2[%c2, %c0_10, %c0_11] : memref<9x8x128xf32, #tpu.memory_space<vmem>>, vector<1x8x128xf32>
    %18 = vector.shape_cast %17 : vector<1x8x128xf32> to vector<8x128xf32>
    %cst_12 = arith.constant dense<0.000000e+00> : vector<256x128xf32>
    %19 = tpu.matmul %16, %18, %cst_12 {dimension_numbers = #tpu.dot_dimension_numbers<[1], [0], [0], [1], [0, 0, 1, 1], [], []>} : vector<256x8xf32>, vector<8x128xf32>, vector<256x128xf32> -> vector<256x128xf32>
    %20 = arith.addf %14, %19 : vector<256x128xf32>
    %21 = vector.extract_strided_slice %1 {offsets = [1, 0, 0], sizes = [16, 16, 8], strides = [1, 1, 1]} : vector<18x18x8xf32> to vector<16x16x8xf32>
    %22 = vector.shape_cast %21 : vector<16x16x8xf32> to vector<256x8xf32>
    %c3 = arith.constant 3 : index
    %c0_13 = arith.constant 0 : index
    %c0_14 = arith.constant 0 : index
    %23 = vector.load %arg2[%c3, %c0_13, %c0_14] : memref<9x8x128xf32, #tpu.memory_space<vmem>>, vector<1x8x128xf32>
    %24 = vector.shape_cast %23 : vector<1x8x128xf32> to vector<8x128xf32>
    %cst_15 = arith.constant dense<0.000000e+00> : vector<256x128xf32>
    %25 = tpu.matmul %22, %24, %cst_15 {dimension_numbers = #tpu.dot_dimension_numbers<[1], [0], [0], [1], [0, 0, 1, 1], [], []>} : vector<256x8xf32>, vector<8x128xf32>, vector<256x128xf32> -> vector<256x128xf32>
    %26 = arith.addf %20, %25 : vector<256x128xf32>
    %27 = vector.extract_strided_slice %1 {offsets = [1, 1, 0], sizes = [16, 16, 8], strides = [1, 1, 1]} : vector<18x18x8xf32> to vector<16x16x8xf32>
    %28 = vector.shape_cast %27 : vector<16x16x8xf32> to vector<256x8xf32>
    %c4 = arith.constant 4 : index
    %c0_16 = arith.constant 0 : index
    %c0_17 = arith.constant 0 : index
    %29 = vector.load %arg2[%c4, %c0_16, %c0_17] : memref<9x8x128xf32, #tpu.memory_space<vmem>>, vector<1x8x128xf32>
    %30 = vector.shape_cast %29 : vector<1x8x128xf32> to vector<8x128xf32>
    %cst_18 = arith.constant dense<0.000000e+00> : vector<256x128xf32>
    %31 = tpu.matmul %28, %30, %cst_18 {dimension_numbers = #tpu.dot_dimension_numbers<[1], [0], [0], [1], [0, 0, 1, 1], [], []>} : vector<256x8xf32>, vector<8x128xf32>, vector<256x128xf32> -> vector<256x128xf32>
    %32 = arith.addf %26, %31 : vector<256x128xf32>
    %33 = vector.extract_strided_slice %1 {offsets = [1, 2, 0], sizes = [16, 16, 8], strides = [1, 1, 1]} : vector<18x18x8xf32> to vector<16x16x8xf32>
    %34 = vector.shape_cast %33 : vector<16x16x8xf32> to vector<256x8xf32>
    %c5 = arith.constant 5 : index
    %c0_19 = arith.constant 0 : index
    %c0_20 = arith.constant 0 : index
    %35 = vector.load %arg2[%c5, %c0_19, %c0_20] : memref<9x8x128xf32, #tpu.memory_space<vmem>>, vector<1x8x128xf32>
    %36 = vector.shape_cast %35 : vector<1x8x128xf32> to vector<8x128xf32>
    %cst_21 = arith.constant dense<0.000000e+00> : vector<256x128xf32>
    %37 = tpu.matmul %34, %36, %cst_21 {dimension_numbers = #tpu.dot_dimension_numbers<[1], [0], [0], [1], [0, 0, 1, 1], [], []>} : vector<256x8xf32>, vector<8x128xf32>, vector<256x128xf32> -> vector<256x128xf32>
    %38 = arith.addf %32, %37 : vector<256x128xf32>
    %39 = vector.extract_strided_slice %1 {offsets = [2, 0, 0], sizes = [16, 16, 8], strides = [1, 1, 1]} : vector<18x18x8xf32> to vector<16x16x8xf32>
    %40 = vector.shape_cast %39 : vector<16x16x8xf32> to vector<256x8xf32>
    %c6 = arith.constant 6 : index
    %c0_22 = arith.constant 0 : index
    %c0_23 = arith.constant 0 : index
    %41 = vector.load %arg2[%c6, %c0_22, %c0_23] : memref<9x8x128xf32, #tpu.memory_space<vmem>>, vector<1x8x128xf32>
    %42 = vector.shape_cast %41 : vector<1x8x128xf32> to vector<8x128xf32>
    %cst_24 = arith.constant dense<0.000000e+00> : vector<256x128xf32>
    %43 = tpu.matmul %40, %42, %cst_24 {dimension_numbers = #tpu.dot_dimension_numbers<[1], [0], [0], [1], [0, 0, 1, 1], [], []>} : vector<256x8xf32>, vector<8x128xf32>, vector<256x128xf32> -> vector<256x128xf32>
    %44 = arith.addf %38, %43 : vector<256x128xf32>
    %45 = vector.extract_strided_slice %1 {offsets = [2, 1, 0], sizes = [16, 16, 8], strides = [1, 1, 1]} : vector<18x18x8xf32> to vector<16x16x8xf32>
    %46 = vector.shape_cast %45 : vector<16x16x8xf32> to vector<256x8xf32>
    %c7 = arith.constant 7 : index
    %c0_25 = arith.constant 0 : index
    %c0_26 = arith.constant 0 : index
    %47 = vector.load %arg2[%c7, %c0_25, %c0_26] : memref<9x8x128xf32, #tpu.memory_space<vmem>>, vector<1x8x128xf32>
    %48 = vector.shape_cast %47 : vector<1x8x128xf32> to vector<8x128xf32>
    %cst_27 = arith.constant dense<0.000000e+00> : vector<256x128xf32>
    %49 = tpu.matmul %46, %48, %cst_27 {dimension_numbers = #tpu.dot_dimension_numbers<[1], [0], [0], [1], [0, 0, 1, 1], [], []>} : vector<256x8xf32>, vector<8x128xf32>, vector<256x128xf32> -> vector<256x128xf32>
    %50 = arith.addf %44, %49 : vector<256x128xf32>
    %51 = vector.extract_strided_slice %1 {offsets = [2, 2, 0], sizes = [16, 16, 8], strides = [1, 1, 1]} : vector<18x18x8xf32> to vector<16x16x8xf32>
    %52 = vector.shape_cast %51 : vector<16x16x8xf32> to vector<256x8xf32>
    %c8 = arith.constant 8 : index
    %c0_28 = arith.constant 0 : index
    %c0_29 = arith.constant 0 : index
    %53 = vector.load %arg2[%c8, %c0_28, %c0_29] : memref<9x8x128xf32, #tpu.memory_space<vmem>>, vector<1x8x128xf32>
    %54 = vector.shape_cast %53 : vector<1x8x128xf32> to vector<8x128xf32>
    %cst_30 = arith.constant dense<0.000000e+00> : vector<256x128xf32>
    %55 = tpu.matmul %52, %54, %cst_30 {dimension_numbers = #tpu.dot_dimension_numbers<[1], [0], [0], [1], [0, 0, 1, 1], [], []>} : vector<256x8xf32>, vector<8x128xf32>, vector<256x128xf32> -> vector<256x128xf32>
    %56 = arith.addf %50, %55 : vector<256x128xf32>
    %c0_31 = arith.constant 0 : index
    %c0_32 = arith.constant 0 : index
    %c0_33 = arith.constant 0 : index
    %57 = vector.load %arg3[%c0_31, %c0_32, %c0_33] : memref<1x256x128xf32, #tpu.memory_space<vmem>>, vector<1x256x128xf32>
    %58 = vector.shape_cast %57 : vector<1x256x128xf32> to vector<256x128xf32>
    %59 = vector.shape_cast %56 : vector<256x128xf32> to vector<1x256x128xf32>
    tpu.vector_store %arg3[%c0_31, %c0_32, %c0_33], %59 {strides = array<i32>} : memref<1x256x128xf32, #tpu.memory_space<vmem>>, vector<1x256x128xf32>,
    %cst_34 = arith.constant dense<0.000000e+00> : vector<128xf32>
    %60 = vector.multi_reduction <add>, %56, %cst_34 [0] : vector<256x128xf32> to vector<128xf32>
    %61 = vector.shape_cast %60 : vector<128xf32> to vector<1x128xf32>
    %c0_35 = arith.constant 0 : index
    %c0_36 = arith.constant 0 : index
    %c0_37 = arith.constant 0 : index
    %62 = vector.load %arg4[%c0_35, %c0_36, %c0_37] : memref<1x1x128xf32, #tpu.memory_space<vmem>>, vector<1x1x128xf32>
    %63 = vector.shape_cast %62 : vector<1x1x128xf32> to vector<1x128xf32>
    %64 = vector.shape_cast %61 : vector<1x128xf32> to vector<1x1x128xf32>
    tpu.vector_store %arg4[%c0_35, %c0_36, %c0_37], %64 {strides = array<i32>} : memref<1x1x128xf32, #tpu.memory_space<vmem>>, vector<1x1x128xf32>,
    %65 = arith.mulf %56, %56 : vector<256x128xf32>
    %cst_38 = arith.constant dense<0.000000e+00> : vector<128xf32>
    %66 = vector.multi_reduction <add>, %65, %cst_38 [0] : vector<256x128xf32> to vector<128xf32>
    %67 = vector.shape_cast %66 : vector<128xf32> to vector<1x128xf32>
    %c0_39 = arith.constant 0 : index
    %c0_40 = arith.constant 0 : index
    %c0_41 = arith.constant 0 : index
    %68 = vector.load %arg5[%c0_39, %c0_40, %c0_41] : memref<1x1x128xf32, #tpu.memory_space<vmem>>, vector<1x1x128xf32>
    %69 = vector.shape_cast %68 : vector<1x1x128xf32> to vector<1x128xf32>
    %70 = vector.shape_cast %67 : vector<1x128xf32> to vector<1x1x128xf32>
    tpu.vector_store %arg5[%c0_39, %c0_40, %c0_41], %70 {strides = array<i32>} : memref<1x1x128xf32, #tpu.memory_space<vmem>>, vector<1x1x128xf32>,
    return
  }
  func.func @transform_0(%arg0: i32) -> (i32, i32, i32, i32) {
    %c0_i32 = arith.constant 0 : i32
    %c0_i32_0 = arith.constant 0 : i32
    %c0_i32_1 = arith.constant 0 : i32
    %c0_i32_2 = arith.constant 0 : i32
    return %arg0, %c0_i32, %c0_i32_0, %c0_i32_1 : i32, i32, i32, i32
  }
  func.func @transform_1(%arg0: i32) -> (i32, i32, i32) {
    %c0_i32 = arith.constant 0 : i32
    %c0_i32_0 = arith.constant 0 : i32
    %c0_i32_1 = arith.constant 0 : i32
    %c0_i32_2 = arith.constant 0 : i32
    return %c0_i32, %c0_i32_0, %c0_i32_1 : i32, i32, i32
  }
  func.func @transform_2(%arg0: i32) -> (i32, i32, i32) {
    %c0_i32 = arith.constant 0 : i32
    %c0_i32_0 = arith.constant 0 : i32
    %c0_i32_1 = arith.constant 0 : i32
    return %arg0, %c0_i32, %c0_i32_0 : i32, i32, i32
  }
  func.func @transform_3(%arg0: i32) -> (i32, i32, i32) {
    %c0_i32 = arith.constant 0 : i32
    %c0_i32_0 = arith.constant 0 : i32
    %c0_i32_1 = arith.constant 0 : i32
    return %arg0, %c0_i32, %c0_i32_0 : i32, i32, i32
  }
  func.func @transform_4(%arg0: i32) -> (i32, i32, i32) {
    %c0_i32 = arith.constant 0 : i32
    %c0_i32_0 = arith.constant 0 : i32
    %c0_i32_1 = arith.constant 0 : i32
    return %arg0, %c0_i32, %c0_i32_0 : i32, i32, i32
  }
}

</mosaic_0001>

<bundles_post_ra>
// kernel: tpu_custom_call.1
= control target key start
LH: loop header
LB: loop body
LE: loop exit
PB: predicated region body
PF: predicated region fallthrough
CT: control target
= control target key end

     0   :  { %10 = vsyncpa [#allocation3], 0  ;;  %s6318_s0 = inlined_call_operand.vmem [shape: f32[2,18,18,8], index: 0, kind: input, shape index: {}]   ;;  %s6319_s1 = inlined_call_operand.vmem [shape: f32[9,8,128], index: 1, kind: input, shape index: {}]   ;;  %s6320_s2 = inlined_call_operand.hbm [shape: f32[2,256,128], index: 2, kind: output, shape index: {0}]   ;;  %s6321_s3 = inlined_call_operand.hbm [shape: f32[2,1,128], index: 3, kind: output, shape index: {1}]   ;;  %s6322_s4 = inlined_call_operand.hbm [shape: f32[2,1,128], index: 4, kind: output, shape index: {2}]  }
   0x1   :  { %12 = vsyncpa [#allocation3 + $0x1], 0 }
   0x2   :  { %13 = vsyncpa [#allocation5], 0 }
   0x3   :  { %15 = vsyncpa [#allocation5 + $0x1], 0  ;;  %s4547_s15 = smov 0   ;;  %s4549_s16 = smov 0  }
   0x4   :  { %s4551_s17 = smov 0   ;;  %s4553_s18 = smov 0  }
   0x5 LB: > { %s4568_s19 = sadd.s32 4294967295, %s4515_s18   ;;  %s3288_s20 = sadd.s32 4294967294, %s4515_s18   ;;  %s4515_s18 = sphi %s4553_s18, %s6622_s18   ;;  %s4511_s17 = sphi %s4551_s17, %s6621_s17   ;;  %s4507_s16 = sphi %s4549_s16, %s6620_s16   ;;  %s4503_s15 = sphi %s4547_s15, %s6619_s15  }
   0x6   : > { %s4572_s21 = sadd.s32 1, %s4515_s18   ;;  %s75_s22 = sadd.s32 1, %s4511_s17 }
   0x7   : > { %s72_s23 = ssub.s32 %s4515_s18, %s4572_s21  ;;  %p85_p0 = scmp.ne.s32.totalorder %s4511_s17, %s4507_s16 }
   0x8   : > { %p73_p1 = scmp.eq.s32.totalorder %s72_s23, 0  ;;  %p86_p2 = scmp.eq.s32.totalorder %s4568_s19, 1 }
   0x9   : > { %p91_p3 = scmp.ne.s32.totalorder %s4507_s16, %s4503_s15  ;;  %p92_p4 = scmp.eq.s32.totalorder %s3288_s20, 1 }
   0xa   : > { %s4585_s24 = scalar_select %p73_p1, %s4511_s17, %s75_s22  }
   0xb   : > { %p4587_p5 = por %p86_p2, %p85_p0  ;;  %p4591_p6 = por %p92_p4, %p91_p3 }
   0xc   : > { %p3291_p7 = scmp.ge.s32.totalorder %s4515_s18, 1  ;;  %p173_p8 = scmp.lt.s32.totalorder %s4515_s18, 3 }
   0xe   : > { %p174_p9 = pnand %p3291_p7, %p173_p8 }
  0x10   : > { %177 = sbr.rel (%p174_p9) target bundleno = 579 (0x243), region = 28 }
  0x15   : > { %v3294_v0 = vld [vmem:[%s6319_s1 + $0x8] sm:$0xff]  ;;  %p207_p10 = scmp.lt.s32.totalorder %s4568_s19, 1  ;;  %v266_v1 = vld [vmem:[%s6319_s1] sm:$0xff]  ;;  %v3359_v2 = vld [vmem:[%s6319_s1 + $0x10] sm:$0xff]  ;;  %vm315_vm0 = vcmask 1046528   ;;  %vm398_vm1 = vcmask 64512  }
  0x16   : > { %4345 = vmatprep.subr.mxu1 %v3294_v0  ;;  %3895 = vmatprep.subr.mxu0 %v3294_v0  ;;  %v4654_v21 = vld [vmem:[%s6319_s1 + $0x18] sm:$0xff]  ;;  %v4672_v28 = vld [vmem:[%s6319_s1 + $0x20] sm:$0xff]  ;;  %vm977_vm2 = vcmask 1045504   ;;  %s4517_s28 = smov [#allocation2]  }
  0x17   : > { %4346 = vmatpush3.msra.mxu1 %v3294_v0  ;;  %3896 = vmatpush3.msra.mxu0 %v3294_v0  ;;  %s208_s7 = scalar_select %p207_p10, %s4568_s19, 1 }
  0x18   : > { %3945 = vmatprep.subr.mxu1 %v266_v1  ;;  %3995 = vmatprep.subr.mxu0 %v3359_v2  ;;  %s4403_s29 = sshll.u32 %s4517_s28, 4  ;;  %s4404_s29 = int_to_ptr.vmem [resolvable:$false] %s4403_s29 }
  0x19   : > { %s4347_s8 = smul.u32 432, %s208_s7  ;;  %s4405_s30 = scalar_lea.vmem %s4404_s29, 8192 }
  0x1b   : > { %s4611_s11 = scalar_lea.vmem %s6318_s0, %s4347_s8  ;;  %s6067_s8 = sand.u32 1, %s4507_s16  }
  0x1c   : > { %v4614_v3 = vld [vmem:[%s4611_s11] sm:$0xff]  ;;  %v4617_v4 = vld [vmem:[%s4611_s11 + $0x8] sm:$0xff]  ;;  %v4629_v10 = vld [vmem:[%s4611_s11 + $0x10] sm:$0x3]  ;;  %s3292_s9 = sshll.u32 %s6067_s8, 8  ;;  %s3126_s23 = scalar_lea.sflag [#allocation3], %s6067_s8 }
  0x1d   : > { %v4620_v5 = vld [vmem:[%s4611_s11 + $0xc0] sm:$0xff]  ;;  %v316_v6 = vrot.slane %v4614_v3, 1  ;;  %v317_v7 = vrot.slane %v4617_v4, 1  ;;  %v4625_v8 = vld [vmem:[%s4611_s11 + $0xc8] sm:$0xff]  ;;  %v319_v12 = vrot.slane %v4629_v10, 1  ;;  %v4637_v14 = vld [vmem:[%s4611_s11 + $0x18] sm:$0xff] }
  0x1e   : > { %v356_v9 = vrot.slane %v4620_v5, 1  ;;  %v357_v11 = vrot.slane %v4625_v8, 1  ;;  %v4634_v13 = vld [vmem:[%s4611_s11 + $0xd0] sm:$0x3]  ;;  %v4642_v17 = vld [vmem:[%s4611_s11 + $0x20] sm:$0xff]  ;;  %v321_v18 = vrot.slane %v4637_v14, 1 }
  0x1f   : > { %v318_v15 = vsel %vm315_vm0, %v316_v6, %v317_v7  ;;  %v359_v16 = vrot.slane %v4634_v13, 1  ;;  %v4646_v19 = vld [vmem:[%s4611_s11 + $0xd8] sm:$0xff]  ;;  %v4649_v20 = vld [vmem:[%s4611_s11 + $0xe0] sm:$0xff]  ;;  %v320_v23 = vsel %vm315_vm0, %v317_v7, %v319_v12  ;;  %v322_v24 = vrot.slane %v4642_v17, 1  ;;  %v4664_v26 = vld [vmem:[%s4611_s11 + $0x28] sm:$0x3] }
  0x20   : > { %3897 = vmatprep.mubr.msk.f32.mxu0 %vm398_vm1, %v318_v15  ;;  %v4658_v22 = vsel %vm315_vm0, %v356_v9, %v357_v11  ;;  %v361_v25 = vrot.slane %v4646_v19, 1  ;;  %v4667_v27 = vld [vmem:[%s4611_s11 + $0xe8] sm:$0x3]  ;;  %v362_v30 = vrot.slane %v4649_v20, 1  ;;  %v324_v31 = vrot.slane %v4664_v26, 1  ;;  %v4684_v33 = vld [vmem:[%s4611_s11 + $0x30] sm:$0xff] }
  0x21   : > { %6407 = vst [vmem:[#allocation9_spill] sm:$0xff] %v4658_v22  ;;  %3921 = vmatprep.mubr.msk.f32.mxu1 %vm398_vm1, %v4658_v22  ;;  %3898 = vmatmul.mubr.msk.f32.vlgmr.msra.gmra.mxu0 %vm398_vm1, %v320_v23  ;;  %v4678_v29 = vsel %vm315_vm0, %v357_v11, %v359_v16  ;;  %v364_v32 = vrot.slane %v4667_v27, 1  ;;  %v4687_v34 = vld [vmem:[%s4611_s11 + $0x38] sm:$0xff]  ;;  %v4690_v35 = vld [vmem:[%s4611_s11 + $0xf0] sm:$0xff]  ;;  %v4695_v36 = vsel %vm315_vm0, %v321_v18, %v322_v24  ;;  %v326_v37 = vrot.slane %v4684_v33, 1  ;;  %v4722_v47 = vld [vmem:[%s4611_s11 + $0x48] sm:$0xff] }
  0x22   : > { %6408 = vst [vmem:[#allocation10_spill] sm:$0xff] %v4678_v29  ;;  %3922 = vmatmul.mubr.msk.f32.vlgmr.msra.gmra.mxu1 %vm398_vm1, %v4678_v29  ;;  %3996 = vmatpush3.msra.mxu0 %v3359_v2  ;;  %6409 = vst [vmem:[#allocation11_spill] sm:$0xff] %v4695_v36  ;;  %v327_v38 = vrot.slane %v4687_v34, 1  ;;  %v4700_v39 = vld [vmem:[%s4611_s11 + $0xf8] sm:$0xff]  ;;  %v366_v40 = vrot.slane %v4690_v35, 1  ;;  %v4709_v42 = vsel %vm315_vm0, %v361_v25, %v362_v30  ;;  %v4725_v48 = vld [vmem:[%s4611_s11 + $0x50] sm:$0xff] }
  0x23   : > { %v4704_v41 = vld [vmem:[%s4611_s11 + $0x40] sm:$0x3]  ;;  %3946 = vmatpush3.msra.mxu1 %v266_v1  ;;  %3900 = vmatprep.mubr.msk.f32.mxu0 %vm398_vm1, %v4695_v36  ;;  %6410 = vst [vmem:[#allocation12_spill] sm:$0xff] %v4709_v42  ;;  %v4712_v43 = vsel %vm315_vm0, %v322_v24, %v324_v31  ;;  %v4715_v44 = vsel %vm315_vm0, %v362_v30, %v364_v32  ;;  %v367_v45 = vrot.slane %v4700_v39, 1  ;;  %v331_v52 = vrot.slane %v4722_v47, 1  ;;  %v4736_v53 = vld [vmem:[%s4611_s11 + $0x108] sm:$0xff] }
  0x24   : > { %6411 = vst [vmem:[#allocation13_spill] sm:$0xff] %v4712_v43  ;;  %6412 = vst [vmem:[#allocation14_spill] sm:$0xff] %v4715_v44  ;;  %v4719_v46 = vld [vmem:[%s4611_s11 + $0x100] sm:$0x3]  ;;  %3924 = vmatprep.mubr.msk.f32.mxu1 %vm398_vm1, %v4709_v42  ;;  %v4730_v49 = vsel %vm315_vm0, %v326_v37, %v327_v38  ;;  %v329_v50 = vrot.slane %v4704_v41, 1  ;;  %v4739_v54 = vld [vmem:[%s4611_s11 + $0x110] sm:$0xff]  ;;  %4045 = vmatprep.subr.mxu1 %v4654_v21 }
  0x25   : > { %6413 = vst [vmem:[#allocation15_spill] sm:$0xff] %v4730_v49  ;;  %v369_v51 = vrot.slane %v4719_v46, 1  ;;  %v4742_v55 = vld [vmem:[%s4611_s11 + $0x60] sm:$0xff]  ;;  %3901 = vmatmul.mubr.msk.f32.gmra.mxu0 %vm398_vm1, %v4712_v43  ;;  %v4748_v56 = vsel %vm315_vm0, %v366_v40, %v367_v45  ;;  %v332_v57 = vrot.slane %v4725_v48, 1  ;;  %v371_v58 = vrot.slane %v4736_v53, 1  ;;  %v4757_v61 = vld [vmem:[%s4611_s11 + $0x68] sm:$0xff]  ;;  %4095 = vmatprep.subr.mxu0 %v4672_v28 }
  0x26   : > { %6414 = vst [vmem:[#allocation16_spill] sm:$0xff] %v4748_v56  ;;  %v372_v59 = vrot.slane %v4739_v54, 1  ;;  %v4754_v60 = vld [vmem:[%s4611_s11 + $0x58] sm:$0x3]  ;;  %3925 = vmatmul.mubr.msk.f32.gmra.mxu1 %vm398_vm1, %v4715_v44  ;;  %3903 = vmatprep.mubr.msk.f32.mxu0 %vm398_vm1, %v4730_v49  ;;  %v4765_v62 = vsel %vm315_vm0, %v327_v38, %v329_v50  ;;  %v336_v1 = vrot.slane %v4742_v55, 1  ;;  %v4773_v2 = vld [vmem:[%s4611_s11 + $0x120] sm:$0xff] }
  0x27   : > { %6415 = vst [vmem:[#allocation17_spill] sm:$0xff] %v4765_v62  ;;  %v334_v63 = vrot.slane %v4754_v60, 1  ;;  %v4769_v0 = vld [vmem:[%s4611_s11 + $0x118] sm:$0x3]  ;;  %v4776_v6 = vld [vmem:[%s4611_s11 + $0x128] sm:$0xff]  ;;  %3927 = vmatprep.mubr.msk.f32.mxu1 %vm398_vm1, %v4748_v56  ;;  %v4781_v7 = vsel %vm315_vm0, %v367_v45, %v369_v51  ;;  %v4784_v9 = vsel %vm315_vm0, %v331_v52, %v332_v57  ;;  %v337_v12 = vrot.slane %v4757_v61, 1 }
  0x28   : > { %6416 = vst [vmem:[#allocation18_spill] sm:$0xff] %v4781_v7  ;;  %6417 = vst [vmem:[#allocation19_spill] sm:$0xff] %v4784_v9  ;;  %v374_v11 = vrot.slane %v4769_v0, 1  ;;  %v4789_v15 = vld [vmem:[%s4611_s11 + $0x70] sm:$0x3]  ;;  %v4795_v18 = vsel %vm315_vm0, %v371_v58, %v372_v59  ;;  %v376_v23 = vrot.slane %v4773_v2, 1 }
  0x29   : > { %v4792_v16 = vld [vmem:[%s4611_s11 + $0x130] sm:$0x3]  ;;  %6418 = vst [vmem:[#allocation20_spill] sm:$0xff] %v4795_v18  ;;  %v377_v24 = vrot.slane %v4776_v6, 1  ;;  %v4800_v25 = vld [vmem:[%s4611_s11 + $0x78] sm:$0xff]  ;;  %v4803_v30 = vld [vmem:[%s4611_s11 + $0x80] sm:$0xff]  ;;  %3904 = vmatmul.mubr.msk.f32.gmra.mxu0 %vm398_vm1, %v4765_v62  ;;  %v4818_v37 = vsel %vm315_vm0, %v332_v57, %v334_v63  ;;  %v4828_v50 = vsel %vm315_vm0, %v336_v1, %v337_v12 }
  0x2a   : > { %v4808_v31 = vld [vmem:[%s4611_s11 + $0x138] sm:$0xff]  ;;  %v4811_v32 = vld [vmem:[%s4611_s11 + $0x140] sm:$0xff]  ;;  %3928 = vmatmul.mubr.msk.f32.gmra.mxu1 %vm398_vm1, %v4781_v7  ;;  %3906 = vmatprep.mubr.msk.f32.mxu0 %vm398_vm1, %v4784_v9  ;;  %6419 = vst [vmem:[#allocation21_spill] sm:$0xff] %v4818_v37  ;;  %v339_v38 = vrot.slane %v4789_v15, 1  ;;  %v379_v40 = vrot.slane %v4792_v16, 1  ;;  %v4825_v45 = vsel %vm315_vm0, %v372_v59, %v374_v11  ;;  %6421 = vst [vmem:[#allocation23_spill] sm:$0xff] %v4828_v50 }
  0x2b   : > { %3930 = vmatprep.mubr.msk.f32.mxu1 %vm398_vm1, %v4795_v18  ;;  %6420 = vst [vmem:[#allocation22_spill] sm:$0xff] %v4825_v45  ;;  %v341_v51 = vrot.slane %v4800_v25, 1  ;;  %v342_v52 = vrot.slane %v4803_v30, 1  ;;  %v4833_v57 = vld [vmem:[%s4611_s11 + $0x88] sm:$0x3]  ;;  %v4839_v63 = vsel %vm315_vm0, %v376_v23, %v377_v24  ;;  %v381_v7 = vrot.slane %v4808_v31, 1 }
  0x2c   : > { %v4836_v58 = vld [vmem:[%s4611_s11 + $0x148] sm:$0x3]  ;;  %6422 = vst [vmem:[#allocation24_spill] sm:$0xff] %v4839_v63  ;;  %v382_v18 = vrot.slane %v4811_v32, 1  ;;  %v4844_v59 = vld [vmem:[%s4611_s11 + $0x90] sm:$0xff]  ;;  %v4847_v1 = vld [vmem:[%s4611_s11 + $0x98] sm:$0xff]  ;;  %v4862_v23 = vsel %vm315_vm0, %v337_v12, %v339_v38  ;;  %v4869_v29 = vsel %vm315_vm0, %v377_v24, %v379_v40 }
  0x2d   : > { %3907 = vmatmul.mubr.msk.f32.gmra.mxu0 %vm398_vm1, %v4818_v37  ;;  %v4852_v11 = vld [vmem:[%s4611_s11 + $0x150] sm:$0xff]  ;;  %v4855_v56 = vld [vmem:[%s4611_s11 + $0x158] sm:$0xff]  ;;  %6424 = vst [vmem:[#allocation26_spill] sm:$0xff] %v4862_v23  ;;  %v344_v44 = vrot.slane %v4833_v57, 1  ;;  %v384_v42 = vrot.slane %v4836_v58, 1  ;;  %6425 = vst [vmem:[#allocation27_spill] sm:$0xff] %v4869_v29 }
  0x2e   : > { %6423 = vst [vmem:[#allocation25_spill] sm:$0xff] %v4855_v56  ;;  %3931 = vmatmul.mubr.msk.f32.gmra.mxu1 %vm398_vm1, %v4825_v45  ;;  %3909 = vmatprep.mubr.msk.f32.mxu0 %vm398_vm1, %v4828_v50  ;;  %v4872_v45 = vsel %vm315_vm0, %v341_v51, %v342_v52  ;;  %v346_v22 = vrot.slane %v4844_v59, 1  ;;  %v347_v12 = vrot.slane %v4847_v1, 1  ;;  %v4877_v38 = vld [vmem:[%s4611_s11 + $0xa0] sm:$0x3]  ;;  %v4880_v50 = vsel %vm315_vm0, %v381_v7, %v382_v18  ;;  %v4888_v24 = vld [vmem:[%s4611_s11 + $0xa8] sm:$0xff] }
  0x2f   : > { %3933 = vmatprep.mubr.msk.f32.mxu1 %vm398_vm1, %v4839_v63  ;;  %6426 = vst [vmem:[#allocation28_spill] sm:$0xff] %v4872_v45  ;;  %6427 = vst [vmem:[#allocation29_spill] sm:$0xff] %v4880_v50  ;;  %v386_v37 = vrot.slane %v4852_v11, 1  ;;  %v387_v9 = vrot.slane %v4855_v56, 1  ;;  %v4885_v63 = vld [vmem:[%s4611_s11 + $0x160] sm:$0x3]  ;;  %v4906_v7 = vsel %vm315_vm0, %v342_v52, %v344_v44  ;;  %v4909_v49 = vsel %vm315_vm0, %v382_v18, %v384_v42 }
  0x30   : > { %v4891_v40 = vld [vmem:[%s4611_s11 + $0xb0] sm:$0xff]  ;;  %v4896_v51 = vld [vmem:[%s4611_s11 + $0x168] sm:$0xff]  ;;  %6429 = vst [vmem:[#allocation31_spill] sm:$0xff] %v4906_v7  ;;  %6430 = vst [vmem:[#allocation32_spill] sm:$0xff] %v4909_v49  ;;  %v349_v43 = vrot.slane %v4877_v38, 1  ;;  %v389_v36 = vrot.slane %v4885_v63, 1 }
  0x31   : > { %3910 = vmatmul.mubr.msk.f32.gmra.mxu0 %vm398_vm1, %v4862_v23  ;;  %v4899_v62 = vld [vmem:[%s4611_s11 + $0x170] sm:$0xff]  ;;  %v4915_v23 = vsel %vm315_vm0, %v346_v22, %v347_v12  ;;  %v4921_v56 = vld [vmem:[%s4611_s11 + $0xb8] sm:$0x3]  ;;  %v4924_v44 = vsel %vm315_vm0, %v386_v37, %v387_v9  ;;  %v391_v42 = vrot.slane %v4896_v51, 1  ;;  %s6087_s10 = scalar_lea.vmem [#allocation2], %s3292_s9 }
  0x32   : > { %6428 = vst [vmem:[#allocation30_spill] sm:$0xff] %v4899_v62  ;;  %3934 = vmatmul.mubr.msk.f32.gmra.mxu1 %vm398_vm1, %v4869_v29  ;;  %3912 = vmatprep.mubr.msk.f32.mxu0 %vm398_vm1, %v4872_v45  ;;  %6431 = vst [vmem:[#allocation33_spill] sm:$0xff] %v4915_v23  ;;  %v351_v29 = vrot.slane %v4888_v24, 1  ;;  %v352_v45 = vrot.slane %v4891_v40, 1  ;;  %v392_v18 = vrot.slane %v4899_v62, 1  ;;  %v4938_v22 = vsel %vm315_vm0, %v347_v12, %v349_v43  ;;  %s3147_s12 = sshll.u32 %s6087_s10, 4  ;;  %s6206_s12 = int_to_ptr.vmem [resolvable:$true] %s3147_s12 }
  0x33   : > { %3936 = vmatprep.mubr.msk.f32.mxu1 %vm398_vm1, %v4880_v50  ;;  %6432 = vst [vmem:[#allocation34_spill] sm:$0xff] %v4924_v44  ;;  %v4929_v52 = vld [vmem:[%s4611_s11 + $0x178] sm:$0x3]  ;;  %6433 = vst [vmem:[#allocation35_spill] sm:$0xff] %v4938_v22  ;;  %v354_v37 = vrot.slane %v4921_v56, 1  ;;  %v978_v50 = vrot.slane %v4614_v3, 2  ;;  %v4945_v62 = vsel %vm315_vm0, %v387_v9, %v389_v36  ;;  %p4406_p0 = scmp.lt.s32.totalorder %s6206_s12, %s4404_s29 }
  0x34   : > { %6434 = vst [vmem:[#allocation36_spill] sm:$0xff] %v4945_v62  ;;  %v4953_v43 = vsel %vm315_vm0, %v391_v42, %v392_v18  ;;  %v981_v12 = vrot.slane %v4629_v10, 2  ;;  %v983_v10 = vrot.slane %v4637_v14, 2  ;;  %v984_v42 = vrot.slane %v4642_v17, 2  ;;  %s4399_s27 = scalar_lea.vmem %s6206_s12, 4096 }
  0x35   : > { %3913 = vmatmul.mubr.msk.f32.gmra.mxu0 %vm398_vm1, %v4906_v7  ;;  %v4948_v7 = vsel %vm315_vm0, %v351_v29, %v352_v45  ;;  %6436 = vst [vmem:[#allocation38_spill] sm:$0xff] %v4953_v43  ;;  %v4963_v29 = vsel %vm315_vm0, %v352_v45, %v354_v37  ;;  %v986_v37 = vrot.slane %v4664_v26, 2  ;;  %v991_v26 = vrot.slane %v4704_v41, 2  ;;  %p4400_p11 = scmp.ne.s32.totalorder %s6206_s12, %s4399_s27  ;;  %p4407_p1 = scmp.lt.s32.totalorder %s4405_s30, %s4399_s27 }
  0x36   : > { %3937 = vmatmul.mubr.msk.f32.gmra.mxu1 %vm398_vm1, %v4909_v49  ;;  %3915 = vmatprep.mubr.msk.f32.mxu0 %vm398_vm1, %v4915_v23  ;;  %6435 = vst [vmem:[#allocation37_spill] sm:$0xff] %v4948_v7  ;;  %v394_v49 = vrot.slane %v4929_v52, 1  ;;  %v979_v23 = vrot.slane %v4617_v4, 2  ;;  %6437 = vst [vmem:[#allocation39_spill] sm:$0xff] %v4963_v29  ;;  %v996_v41 = vrot.slane %v4754_v60, 2 }
  0x37   : > { %3939 = vmatprep.mubr.msk.f32.mxu1 %vm398_vm1, %v4924_v44  ;;  %p4401_p12 = pnand %p4400_p11, %p4587_p5  ;;  %p4408_p2 = por %p4407_p1, %p4406_p0 }
  0x38   : > { %v4968_v36 = vsel %vm315_vm0, %v392_v18, %v394_v49  ;;  %v980_v9 = vsel %vm977_vm2, %v978_v50, %v979_v23  ;;  %v982_v45 = vsel %vm977_vm2, %v979_v23, %v981_v12  ;;  %v988_v49 = vrot.slane %v4684_v33, 2  ;;  %v5003_v23 = vld [vmem:[%s6319_s1 + $0x30] sm:$0xff] }
  0x39   : > { %3916 = vmatmul.mubr.msk.f32.gmra.mxu0 %vm398_vm1, %v4938_v22  ;;  %6438 = vst [vmem:[#allocation40_spill] sm:$0xff] %v4968_v36  ;;  %v989_v50 = vrot.slane %v4687_v34, 2  ;;  %v4986_v18 = vsel %vm977_vm2, %v983_v10, %v984_v42  ;;  %p4402_p13 = pneg %p4401_p12 }
  0x3a   : > { %3940 = vmatmul.mubr.msk.f32.gmra.mxu1 %vm398_vm1, %v4945_v62  ;;  %3918 = vmatprep.mubr.msk.f32.mxu0 %vm398_vm1, %v4948_v7 }
  0x3b   : > { %3942 = vmatprep.mubr.msk.f32.mxu1 %vm398_vm1, %v4953_v43  ;;  %v5009_v12 = vsel %vm977_vm2, %v988_v49, %v989_v50  ;;  %p4409_p3 = pnand %p4408_p2, %p4402_p13 }
  0x3d   : > { %3919 = vmatmul.mubr.msk.f32.gmra.mxu0 %vm398_vm1, %v4963_v29 }
  0x3e   : > { %3943 = vmatmul.mubr.msk.f32.gmra.mxu1 %vm398_vm1, %v4968_v36  ;;  %3997 = vmatprep.mubr.msk.f32.mxu0 %vm398_vm1, %v980_v9  ;;  %v4991_v9 = vld [vmem:[%s6319_s1 + $0x28] sm:$0xff] }
  0x3f   : > { %3947 = vmatprep.mubr.msk.f32.mxu1 %vm398_vm1, %v4614_v3  ;;  %v4997_v3 = vsel %vm977_vm2, %v984_v42, %v986_v37  ;;  %v998_v42 = vrot.slane %v4742_v55, 2  ;;  %v1001_v37 = vrot.slane %v4789_v15, 2 }
  0x41   : > { %3998 = vmatmul.mubr.msk.f32.vlgmr.msra.gmra.mxu0 %vm398_vm1, %v982_v45  ;;  %v999_v45 = vrot.slane %v4757_v61, 2 }
  0x42   : > { %3948 = vmatmul.mubr.msk.f32.vlgmr.msra.gmra.mxu1 %vm398_vm1, %v4617_v4  ;;  %4096 = vmatpush3.msra.mxu0 %v4672_v28  ;;  %v993_v4 = vrot.slane %v4722_v47, 2  ;;  %v994_v28 = vrot.slane %v4725_v48, 2 }
  0x43   : > { %4046 = vmatpush3.msra.mxu1 %v4654_v21  ;;  %3950 = vmatprep.mubr.msk.f32.mxu1 %vm398_vm1, %v4637_v14  ;;  %v5024_v21 = vsel %vm977_vm2, %v989_v50, %v991_v26  ;;  %v5047_v49 = vsel %vm977_vm2, %v998_v42, %v999_v45  ;;  %v1003_v50 = vrot.slane %v4800_v25, 2  ;;  %v1004_v26 = vrot.slane %v4803_v30, 2 }
  0x44   : > { %4000 = vmatprep.mubr.msk.f32.mxu0 %vm398_vm1, %v4986_v18  ;;  %4145 = vmatprep.subr.mxu1 %v4991_v9  ;;  %v5030_v10 = vsel %vm977_vm2, %v993_v4, %v994_v28  ;;  %v5041_v60 = vsel %vm977_vm2, %v994_v28, %v996_v41  ;;  %v5058_v15 = vsel %vm977_vm2, %v999_v45, %v1001_v37  ;;  %v1006_v4 = vrot.slane %v4833_v57, 2 }
  0x45   : > { %4001 = vmatmul.mubr.msk.f32.gmra.mxu0 %vm398_vm1, %v4997_v3  ;;  %4195 = vmatprep.subr.mxu0 %v5003_v23  ;;  %6439 = vst [vmem:[#allocation41_spill] sm:$0xff] %v5058_v15  ;;  %v5064_v28 = vsel %vm977_vm2, %v1003_v50, %v1004_v26  ;;  %v1008_v41 = vrot.slane %v4844_v59, 2  ;;  %v1009_v42 = vrot.slane %v4847_v1, 2  ;;  %v1011_v45 = vrot.slane %v4877_v38, 2 }
  0x46   : > { %3951 = vmatmul.mubr.msk.f32.gmra.mxu1 %vm398_vm1, %v4642_v17  ;;  %4003 = vmatprep.mubr.msk.f32.mxu0 %vm398_vm1, %v5009_v12  ;;  %v5075_v57 = vsel %vm977_vm2, %v1004_v26, %v1006_v4  ;;  %v1013_v50 = vrot.slane %v4888_v24, 2  ;;  %v1016_v26 = vrot.slane %v4921_v56, 2 }
  0x47   : > { %3953 = vmatprep.mubr.msk.f32.mxu1 %vm398_vm1, %v4684_v33  ;;  %6440 = vst [vmem:[#allocation42_spill] sm:$0xff] %v5075_v57  ;;  %v5081_v37 = vsel %vm977_vm2, %v1008_v41, %v1009_v42  ;;  %v5092_v38 = vsel %vm977_vm2, %v1009_v42, %v1011_v45  ;;  %v1018_v41 = vrot.slane %v4620_v5, 2  ;;  %v1021_v42 = vrot.slane %v4634_v13, 2 }
  0x48   : > { %6441 = vst [vmem:[#allocation43_spill] sm:$0xff] %v5092_v38 }
  0x49   : > { %4004 = vmatmul.mubr.msk.f32.gmra.mxu0 %vm398_vm1, %v5024_v21 }
  0x4a   : > { %3954 = vmatmul.mubr.msk.f32.gmra.mxu1 %vm398_vm1, %v4687_v34  ;;  %4006 = vmatprep.mubr.msk.f32.mxu0 %vm398_vm1, %v5030_v10 }
  0x4b   : > { %3956 = vmatprep.mubr.msk.f32.mxu1 %vm398_vm1, %v4722_v47 }
  0x4d   : > { %4007 = vmatmul.mubr.msk.f32.gmra.mxu0 %vm398_vm1, %v5041_v60 }
  0x4e   : > { %3957 = vmatmul.mubr.msk.f32.gmra.mxu1 %vm398_vm1, %v4725_v48  ;;  %4009 = vmatprep.mubr.msk.f32.mxu0 %vm398_vm1, %v5047_v49 }
  0x4f   : > { %3959 = vmatprep.mubr.msk.f32.mxu1 %vm398_vm1, %v4742_v55 }
  0x51   : > { %4010 = vmatmul.mubr.msk.f32.gmra.mxu0 %vm398_vm1, %v5058_v15  ;;  %v1014_v15 = vrot.slane %v4891_v40, 2 }
  0x52   : > { %3960 = vmatmul.mubr.msk.f32.gmra.mxu1 %vm398_vm1, %v4757_v61  ;;  %4012 = vmatprep.mubr.msk.f32.mxu0 %vm398_vm1, %v5064_v28 }
  0x53   : > { %3962 = vmatprep.mubr.msk.f32.mxu1 %vm398_vm1, %v4800_v25  ;;  %v5098_v4 = vsel %vm977_vm2, %v1013_v50, %v1014_v15  ;;  %v5109_v56 = vsel %vm977_vm2, %v1014_v15, %v1016_v26  ;;  %v1023_v50 = vrot.slane %v4646_v19, 2  ;;  %v1026_v15 = vrot.slane %v4667_v27, 2 }
  0x54   : > { %6442 = vst [vmem:[#allocation44_spill] sm:$0xff] %v5109_v56 }
  0x55   : > { %4013 = vmatmul.mubr.msk.f32.gmra.mxu0 %vm398_vm1, %v5075_v57  ;;  %v1019_v57 = vrot.slane %v4625_v8, 2 }
  0x56   : > { %3963 = vmatmul.mubr.msk.f32.gmra.mxu1 %vm398_vm1, %v4803_v30  ;;  %4015 = vmatprep.mubr.msk.f32.mxu0 %vm398_vm1, %v5081_v37 }
  0x57   : > { %3965 = vmatprep.mubr.msk.f32.mxu1 %vm398_vm1, %v4844_v59  ;;  %v5115_v45 = vsel %vm977_vm2, %v1018_v41, %v1019_v57  ;;  %v5126_v13 = vsel %vm977_vm2, %v1019_v57, %v1021_v42  ;;  %v1028_v41 = vrot.slane %v4690_v35, 2  ;;  %v1031_v57 = vrot.slane %v4719_v46, 2 }
  0x58   : > { %6443 = vst [vmem:[#allocation45_spill] sm:$0xff] %v5126_v13 }
  0x59   : > { %4016 = vmatmul.mubr.msk.f32.gmra.mxu0 %vm398_vm1, %v5092_v38  ;;  %v1024_v38 = vrot.slane %v4649_v20, 2 }
  0x5a   : > { %3966 = vmatmul.mubr.msk.f32.gmra.mxu1 %vm398_vm1, %v4847_v1  ;;  %4018 = vmatprep.mubr.msk.f32.mxu0 %vm398_vm1, %v5098_v4 }
  0x5b   : > { %3968 = vmatprep.mubr.msk.f32.mxu1 %vm398_vm1, %v4888_v24  ;;  %v5132_v26 = vsel %vm977_vm2, %v1023_v50, %v1024_v38  ;;  %v5143_v27 = vsel %vm977_vm2, %v1024_v38, %v1026_v15  ;;  %v1033_v50 = vrot.slane %v4736_v53, 2  ;;  %v1036_v38 = vrot.slane %v4769_v0, 2 }
  0x5c   : > { %6444 = vst [vmem:[#allocation46_spill] sm:$0xff] %v5143_v27 }
  0x5d   : > { %4019 = vmatmul.mubr.msk.f32.gmra.mxu0 %vm398_vm1, %v5109_v56  ;;  %v1029_v56 = vrot.slane %v4700_v39, 2 }
  0x5e   : > { %3969 = vmatmul.mubr.msk.f32.gmra.mxu1 %vm398_vm1, %v4891_v40  ;;  %4021 = vmatprep.mubr.msk.f32.mxu0 %vm398_vm1, %v5115_v45 }
  0x5f   : > { %3971 = vmatprep.mubr.msk.f32.mxu1 %vm398_vm1, %v4620_v5  ;;  %v5149_v42 = vsel %vm977_vm2, %v1028_v41, %v1029_v56  ;;  %v5160_v46 = vsel %vm977_vm2, %v1029_v56, %v1031_v57  ;;  %v1038_v41 = vrot.slane %v4773_v2, 2  ;;  %v1041_v56 = vrot.slane %v4792_v16, 2 }
  0x60   : > { %6445 = vst [vmem:[#allocation47_spill] sm:$0xff] %v5160_v46 }
  0x61   : > { %4022 = vmatmul.mubr.msk.f32.gmra.mxu0 %vm398_vm1, %v5126_v13  ;;  %v1034_v13 = vrot.slane %v4739_v54, 2 }
  0x62   : > { %3972 = vmatmul.mubr.msk.f32.gmra.mxu1 %vm398_vm1, %v4625_v8  ;;  %4024 = vmatprep.mubr.msk.f32.mxu0 %vm398_vm1, %v5132_v26 }
  0x63   : > { %3974 = vmatprep.mubr.msk.f32.mxu1 %vm398_vm1, %v4646_v19  ;;  %v5166_v15 = vsel %vm977_vm2, %v1033_v50, %v1034_v13  ;;  %v5177_v0 = vsel %vm977_vm2, %v1034_v13, %v1036_v38  ;;  %v1043_v50 = vrot.slane %v4808_v31, 2  ;;  %v1046_v13 = vrot.slane %v4836_v58, 2 }
  0x64   : > { %6446 = vst [vmem:[#allocation48_spill] sm:$0xff] %v5166_v15  ;;  %6447 = vst [vmem:[#allocation49_spill] sm:$0xff] %v5177_v0 }
  0x65   : > { %4025 = vmatmul.mubr.msk.f32.gmra.mxu0 %vm398_vm1, %v5143_v27  ;;  %v1039_v27 = vrot.slane %v4776_v6, 2 }
  0x66   : > { %3975 = vmatmul.mubr.msk.f32.gmra.mxu1 %vm398_vm1, %v4649_v20  ;;  %4027 = vmatprep.mubr.msk.f32.mxu0 %vm398_vm1, %v5149_v42 }
  0x67   : > { %3977 = vmatprep.mubr.msk.f32.mxu1 %vm398_vm1, %v4690_v35  ;;  %v5183_v57 = vsel %vm977_vm2, %v1038_v41, %v1039_v27  ;;  %v5194_v16 = vsel %vm977_vm2, %v1039_v27, %v1041_v56  ;;  %v1048_v41 = vrot.slane %v4852_v11, 2  ;;  %v1051_v27 = vrot.slane %v4885_v63, 2 }
  0x68   : > { %6448 = vst [vmem:[#allocation50_spill] sm:$0xff] %v5183_v57  ;;  %6449 = vst [vmem:[#allocation51_spill] sm:$0xff] %v5194_v16 }
  0x69   : > { %4028 = vmatmul.mubr.msk.f32.gmra.mxu0 %vm398_vm1, %v5160_v46  ;;  %v1044_v46 = vrot.slane %v4811_v32, 2 }
  0x6a   : > { %3978 = vmatmul.mubr.msk.f32.gmra.mxu1 %vm398_vm1, %v4700_v39  ;;  %4030 = vmatprep.mubr.msk.f32.mxu0 %vm398_vm1, %v5166_v15 }
  0x6b   : > { %3980 = vmatprep.mubr.msk.f32.mxu1 %vm398_vm1, %v4736_v53  ;;  %v5200_v38 = vsel %vm977_vm2, %v1043_v50, %v1044_v46  ;;  %v5211_v58 = vsel %vm977_vm2, %v1044_v46, %v1046_v13  ;;  %v1053_v50 = vrot.slane %v4896_v51, 2  ;;  %v1056_v46 = vrot.slane %v4929_v52, 2  ;;  %v6453_v52 = vld [vmem:[#allocation11_spill] sm:$0xff] }
  0x6d   : > { %4031 = vmatmul.mubr.msk.f32.gmra.mxu0 %vm398_vm1, %v5177_v0  ;;  %v6450_v0 = vld [vmem:[#allocation25_spill] sm:$0xff] }
  0x6e   : > { %3981 = vmatmul.mubr.msk.f32.gmra.mxu1 %vm398_vm1, %v4739_v54  ;;  %4033 = vmatprep.mubr.msk.f32.mxu0 %vm398_vm1, %v5183_v57  ;;  %v1049_v15 = vrot.slane %v6450_v0, 2 }
  0x6f   : > { %3983 = vmatprep.mubr.msk.f32.mxu1 %vm398_vm1, %v4773_v2 }
  0x70   : > { %v5217_v56 = vsel %vm977_vm2, %v1048_v41, %v1049_v15  ;;  %v5228_v63 = vsel %vm977_vm2, %v1049_v15, %v1051_v27  ;;  %v6454_v41 = vld [vmem:[#allocation13_spill] sm:$0xff] }
  0x71   : > { %4034 = vmatmul.mubr.msk.f32.gmra.mxu0 %vm398_vm1, %v5194_v16  ;;  %v6451_v16 = vld [vmem:[#allocation30_spill] sm:$0xff]  ;;  %v5268_v27 = vld [vmem:[%s6319_s1 + $0x40] sm:$0xff] }
  0x72   : > { %3984 = vmatmul.mubr.msk.f32.gmra.mxu1 %vm398_vm1, %v4776_v6  ;;  %4036 = vmatprep.mubr.msk.f32.mxu0 %vm398_vm1, %v5200_v38  ;;  %v1054_v57 = vrot.slane %v6451_v16, 2 }
  0x73   : > { %3986 = vmatprep.mubr.msk.f32.mxu1 %vm398_vm1, %v4808_v31 }
  0x74   : > { %v5234_v13 = vsel %vm977_vm2, %v1053_v50, %v1054_v57  ;;  %v5243_v15 = vsel %vm977_vm2, %v1054_v57, %v1056_v46  ;;  %v5260_v57 = vld [vmem:[%s6319_s1 + $0x38] sm:$0xff]  ;;  %v6456_v50 = vld [vmem:[#allocation17_spill] sm:$0xff]  ;;  %v6460_v46 = vld [vmem:[#allocation26_spill] sm:$0xff] }
  0x75   : > { %4037 = vmatmul.mubr.msk.f32.gmra.mxu0 %vm398_vm1, %v5211_v58  ;;  %6452 = vst [vmem:[#allocation25_spill] sm:$0xff] %v5243_v15 }
  0x76   : > { %3987 = vmatmul.mubr.msk.f32.gmra.mxu1 %vm398_vm1, %v4811_v32  ;;  %4039 = vmatprep.mubr.msk.f32.mxu0 %vm398_vm1, %v5217_v56 }
  0x77   : > { %3989 = vmatprep.mubr.msk.f32.mxu1 %vm398_vm1, %v4852_v11 }
  0x79   : > { %4040 = vmatmul.mubr.msk.f32.gmra.mxu0 %vm398_vm1, %v5228_v63 }
  0x7a   : > { %3990 = vmatmul.mubr.msk.f32.gmra.mxu1 %vm398_vm1, %v6450_v0  ;;  %4042 = vmatprep.mubr.msk.f32.mxu0 %vm398_vm1, %v5234_v13 }
  0x7b   : > { %3992 = vmatprep.mubr.msk.f32.mxu1 %vm398_vm1, %v4896_v51 }
  0x7d   : > { %4043 = vmatmul.mubr.msk.f32.gmra.mxu0 %vm398_vm1, %v5243_v15 }
  0x7e   : > { %3993 = vmatmul.mubr.msk.f32.gmra.mxu1 %vm398_vm1, %v6451_v16  ;;  %4097 = vmatprep.mubr.msk.f32.mxu0 %vm398_vm1, %v6453_v52  ;;  %v6461_v52 = vld [vmem:[#allocation28_spill] sm:$0xff] }
  0x7f   : > { %4047 = vmatprep.mubr.msk.f32.mxu1 %vm398_vm1, %v4637_v14  ;;  %v6455_v14 = vld [vmem:[#allocation15_spill] sm:$0xff] }
  0x81   : > { %4098 = vmatmul.mubr.msk.f32.vlgmr.msra.gmra.mxu0 %vm398_vm1, %v6454_v41  ;;  %v6462_v41 = vld [vmem:[#allocation31_spill] sm:$0xff] }
  0x82   : > { %4048 = vmatmul.mubr.msk.f32.vlgmr.msra.gmra.mxu1 %vm398_vm1, %v4642_v17  ;;  %4196 = vmatpush3.msra.mxu0 %v5003_v23  ;;  %v6457_v17 = vld [vmem:[#allocation19_spill] sm:$0xff] }
  0x83   : > { %4146 = vmatpush3.msra.mxu1 %v4991_v9  ;;  %4050 = vmatprep.mubr.msk.f32.mxu1 %vm398_vm1, %v4684_v33  ;;  %v6458_v9 = vld [vmem:[#allocation21_spill] sm:$0xff]  ;;  %v6459_v23 = vld [vmem:[#allocation23_spill] sm:$0xff] }
  0x84   : > { %4100 = vmatprep.mubr.msk.f32.mxu0 %vm398_vm1, %v6455_v14  ;;  %4245 = vmatprep.subr.mxu1 %v5260_v57 }
  0x85   : > { %4101 = vmatmul.mubr.msk.f32.gmra.mxu0 %vm398_vm1, %v6456_v50  ;;  %4295 = vmatprep.subr.mxu0 %v5268_v27 }
  0x86   : > { %4051 = vmatmul.mubr.msk.f32.gmra.mxu1 %vm398_vm1, %v4687_v34  ;;  %4103 = vmatprep.mubr.msk.f32.mxu0 %vm398_vm1, %v6457_v17 }
  0x87   : > { %4053 = vmatprep.mubr.msk.f32.mxu1 %vm398_vm1, %v4722_v47 }
  0x89   : > { %4104 = vmatmul.mubr.msk.f32.gmra.mxu0 %vm398_vm1, %v6458_v9 }
  0x8a   : > { %4054 = vmatmul.mubr.msk.f32.gmra.mxu1 %vm398_vm1, %v4725_v48  ;;  %4106 = vmatprep.mubr.msk.f32.mxu0 %vm398_vm1, %v6459_v23  ;;  %v6463_v23 = vld [vmem:[#allocation33_spill] sm:$0xff] }
  0x8b   : > { %4056 = vmatprep.mubr.msk.f32.mxu1 %vm398_vm1, %v4742_v55 }
  0x8d   : > { %4107 = vmatmul.mubr.msk.f32.gmra.mxu0 %vm398_vm1, %v6460_v46 }
  0x8e   : > { %4057 = vmatmul.mubr.msk.f32.gmra.mxu1 %vm398_vm1, %v4757_v61  ;;  %4109 = vmatprep.mubr.msk.f32.mxu0 %vm398_vm1, %v6461_v52  ;;  %v5382_v52 = vld [vmem:[%s4611_s11 + $0x190] sm:$0x3] }
  0x8f   : > { %4059 = vmatprep.mubr.msk.f32.mxu1 %vm398_vm1, %v4800_v25 }
  0x91   : > { %4110 = vmatmul.mubr.msk.f32.gmra.mxu0 %vm398_vm1, %v6462_v41  ;;  %v5369_v41 = vld [vmem:[%s4611_s11 + $0x188] sm:$0xff] }
  0x92   : > { %4060 = vmatmul.mubr.msk.f32.gmra.mxu1 %vm398_vm1, %v4803_v30  ;;  %4112 = vmatprep.mubr.msk.f32.mxu0 %vm398_vm1, %v6463_v23  ;;  %v6464_v23 = vld [vmem:[#allocation9_spill] sm:$0xff] }
  0x93   : > { %4062 = vmatprep.mubr.msk.f32.mxu1 %vm398_vm1, %v4844_v59 }
  0x95   : > { %4113 = vmatmul.mubr.msk.f32.gmra.mxu0 %vm398_vm1, %v4938_v22  ;;  %v6465_v22 = vld [vmem:[#allocation10_spill] sm:$0xff] }
  0x96   : > { %4063 = vmatmul.mubr.msk.f32.gmra.mxu1 %vm398_vm1, %v4847_v1  ;;  %4115 = vmatprep.mubr.msk.f32.mxu0 %vm398_vm1, %v4948_v7  ;;  %v6466_v7 = vld [vmem:[#allocation12_spill] sm:$0xff] }
  0x97   : > { %4065 = vmatprep.mubr.msk.f32.mxu1 %vm398_vm1, %v4888_v24 }
  0x99   : > { %4116 = vmatmul.mubr.msk.f32.gmra.mxu0 %vm398_vm1, %v4963_v29  ;;  %v6467_v29 = vld [vmem:[#allocation14_spill] sm:$0xff] }
  0x9a   : > { %4066 = vmatmul.mubr.msk.f32.gmra.mxu1 %vm398_vm1, %v4891_v40  ;;  %4118 = vmatprep.mubr.msk.f32.mxu0 %vm398_vm1, %v6464_v23  ;;  %v6468_v23 = vld [vmem:[#allocation16_spill] sm:$0xff] }
  0x9b   : > { %4068 = vmatprep.mubr.msk.f32.mxu1 %vm398_vm1, %v4620_v5 }
  0x9d   : > { %4119 = vmatmul.mubr.msk.f32.gmra.mxu0 %vm398_vm1, %v6465_v22  ;;  %v6469_v22 = vld [vmem:[#allocation18_spill] sm:$0xff] }
  0x9e   : > { %4069 = vmatmul.mubr.msk.f32.gmra.mxu1 %vm398_vm1, %v4625_v8  ;;  %4121 = vmatprep.mubr.msk.f32.mxu0 %vm398_vm1, %v6466_v7  ;;  %v6470_v7 = vld [vmem:[#allocation20_spill] sm:$0xff] }
  0x9f   : > { %4071 = vmatprep.mubr.msk.f32.mxu1 %vm398_vm1, %v4646_v19 }
  0xa1   : > { %4122 = vmatmul.mubr.msk.f32.gmra.mxu0 %vm398_vm1, %v6467_v29  ;;  %v6471_v29 = vld [vmem:[#allocation22_spill] sm:$0xff] }
  0xa2   : > { %4072 = vmatmul.mubr.msk.f32.gmra.mxu1 %vm398_vm1, %v4649_v20  ;;  %4124 = vmatprep.mubr.msk.f32.mxu0 %vm398_vm1, %v6468_v23  ;;  %v6472_v23 = vld [vmem:[#allocation24_spill] sm:$0xff] }
  0xa3   : > { %4074 = vmatprep.mubr.msk.f32.mxu1 %vm398_vm1, %v4690_v35 }
  0xa5   : > { %4125 = vmatmul.mubr.msk.f32.gmra.mxu0 %vm398_vm1, %v6469_v22  ;;  %v6473_v22 = vld [vmem:[#allocation27_spill] sm:$0xff] }
  0xa6   : > { %4075 = vmatmul.mubr.msk.f32.gmra.mxu1 %vm398_vm1, %v4700_v39  ;;  %4127 = vmatprep.mubr.msk.f32.mxu0 %vm398_vm1, %v6470_v7  ;;  %v6474_v7 = vld [vmem:[#allocation29_spill] sm:$0xff] }
  0xa7   : > { %4077 = vmatprep.mubr.msk.f32.mxu1 %vm398_vm1, %v4736_v53 }
  0xa9   : > { %4128 = vmatmul.mubr.msk.f32.gmra.mxu0 %vm398_vm1, %v6471_v29  ;;  %v5366_v29 = vld [vmem:[%s4611_s11 + $0x180] sm:$0xff] }
  0xaa   : > { %4078 = vmatmul.mubr.msk.f32.gmra.mxu1 %vm398_vm1, %v4739_v54  ;;  %4130 = vmatprep.mubr.msk.f32.mxu0 %vm398_vm1, %v6472_v23  ;;  %v6475_v23 = vld [vmem:[#allocation32_spill] sm:$0xff] }
  0xab   : > { %4080 = vmatprep.mubr.msk.f32.mxu1 %vm398_vm1, %v4773_v2 }
  0xad   : > { %4131 = vmatmul.mubr.msk.f32.gmra.mxu0 %vm398_vm1, %v6473_v22  ;;  %v1648_v22 = vrot.slane %v5369_v41, 1 }
  0xae   : > { %4081 = vmatmul.mubr.msk.f32.gmra.mxu1 %vm398_vm1, %v4776_v6  ;;  %4133 = vmatprep.mubr.msk.f32.mxu0 %vm398_vm1, %v6474_v7  ;;  %v1647_v7 = vrot.slane %v5366_v29, 1 }
  0xaf   : > { %4083 = vmatprep.mubr.msk.f32.mxu1 %vm398_vm1, %v4808_v31 }
  0xb1   : > { %4134 = vmatmul.mubr.msk.f32.gmra.mxu0 %vm398_vm1, %v6475_v23  ;;  %v5394_v23 = vsel %vm315_vm0, %v1647_v7, %v1648_v22 }
  0xb2   : > { %4084 = vmatmul.mubr.msk.f32.gmra.mxu1 %vm398_vm1, %v4811_v32  ;;  %4136 = vmatprep.mubr.msk.f32.mxu0 %vm398_vm1, %v4924_v44  ;;  %v1650_v44 = vrot.slane %v5382_v52, 1  ;;  %6476 = vst [vmem:[#allocation30_spill] sm:$0xff] %v5394_v23 }
  0xb3   : > { %4086 = vmatprep.mubr.msk.f32.mxu1 %vm398_vm1, %v4852_v11 }
  0xb5   : > { %4137 = vmatmul.mubr.msk.f32.gmra.mxu0 %vm398_vm1, %v4945_v62  ;;  %v5403_v62 = vsel %vm315_vm0, %v1648_v22, %v1650_v44  ;;  %v6488_v22 = vld [vmem:[#allocation51_spill] sm:$0xff] }
  0xb6   : > { %4087 = vmatmul.mubr.msk.f32.gmra.mxu1 %vm398_vm1, %v6450_v0  ;;  %4139 = vmatprep.mubr.msk.f32.mxu0 %vm398_vm1, %v4953_v43  ;;  %6477 = vst [vmem:[#allocation11_spill] sm:$0xff] %v5403_v62 }
  0xb7   : > { %4089 = vmatprep.mubr.msk.f32.mxu1 %vm398_vm1, %v4896_v51 }
  0xb9   : > { %4140 = vmatmul.mubr.msk.f32.gmra.mxu0 %vm398_vm1, %v4968_v36  ;;  %v5578_v36 = vld [vmem:[%s4611_s11 + $0x198] sm:$0xff] }
  0xba   : > { %4090 = vmatmul.mubr.msk.f32.gmra.mxu1 %vm398_vm1, %v6451_v16  ;;  %4142 = vmatprep.mubr.msk.f32.mxu0 %vm398_vm1, %v5394_v23 }
  0xbb   : > { %4092 = vmatprep.mubr.msk.f32.mxu1 %vm398_vm1, %v5366_v29 }
  0xbd   : > { %4143 = vmatmul.mubr.msk.f32.gmra.mxu0 %vm398_vm1, %v5403_v62 }
  0xbe   : > { %4093 = vmatmul.mubr.msk.f32.gmra.mxu1 %vm398_vm1, %v5369_v41  ;;  %4197 = vmatprep.mubr.msk.f32.mxu0 %vm398_vm1, %v4684_v33  ;;  %v6478_v33 = vld [vmem:[#allocation41_spill] sm:$0xff] }
  0xbf   : > { %4147 = vmatprep.mubr.msk.f32.mxu1 %vm398_vm1, %v4986_v18 }
  0xc1   : > { %4198 = vmatmul.mubr.msk.f32.vlgmr.msra.gmra.mxu0 %vm398_vm1, %v4687_v34  ;;  %v6479_v34 = vld [vmem:[#allocation42_spill] sm:$0xff] }
  0xc2   : > { %4148 = vmatmul.mubr.msk.f32.vlgmr.msra.gmra.mxu1 %vm398_vm1, %v4997_v3  ;;  %4296 = vmatpush3.msra.mxu0 %v5268_v27 }
  0xc3   : > { %4246 = vmatpush3.msra.mxu1 %v5260_v57  ;;  %4150 = vmatprep.mubr.msk.f32.mxu1 %vm398_vm1, %v5009_v12  ;;  %v1915_v57 = vrot.slane %v5366_v29, 2 }
  0xc4   : > { %4200 = vmatprep.mubr.msk.f32.mxu0 %vm398_vm1, %v4722_v47  ;;  %v6480_v47 = vld [vmem:[#allocation43_spill] sm:$0xff] }
  0xc5   : > { %4201 = vmatmul.mubr.msk.f32.gmra.mxu0 %vm398_vm1, %v4725_v48  ;;  %v6481_v48 = vld [vmem:[#allocation44_spill] sm:$0xff] }
  0xc6   : > { %4151 = vmatmul.mubr.msk.f32.gmra.mxu1 %vm398_vm1, %v5024_v21  ;;  %4203 = vmatprep.mubr.msk.f32.mxu0 %vm398_vm1, %v4742_v55  ;;  %v6482_v55 = vld [vmem:[#allocation45_spill] sm:$0xff] }
  0xc7   : > { %4153 = vmatprep.mubr.msk.f32.mxu1 %vm398_vm1, %v5030_v10 }
  0xc9   : > { %4204 = vmatmul.mubr.msk.f32.gmra.mxu0 %vm398_vm1, %v4757_v61 }
  0xca   : > { %4154 = vmatmul.mubr.msk.f32.gmra.mxu1 %vm398_vm1, %v5041_v60  ;;  %4206 = vmatprep.mubr.msk.f32.mxu0 %vm398_vm1, %v4800_v25  ;;  %v6484_v25 = vld [vmem:[#allocation47_spill] sm:$0xff] }
  0xcb   : > { %4156 = vmatprep.mubr.msk.f32.mxu1 %vm398_vm1, %v5047_v49 }
  0xcd   : > { %4207 = vmatmul.mubr.msk.f32.gmra.mxu0 %vm398_vm1, %v4803_v30  ;;  %v6485_v30 = vld [vmem:[#allocation48_spill] sm:$0xff] }
  0xce   : > { %4157 = vmatmul.mubr.msk.f32.gmra.mxu1 %vm398_vm1, %v6478_v33  ;;  %4209 = vmatprep.mubr.msk.f32.mxu0 %vm398_vm1, %v4844_v59 }
  0xcf   : > { %4159 = vmatprep.mubr.msk.f32.mxu1 %vm398_vm1, %v5064_v28 }
  0xd1   : > { %4210 = vmatmul.mubr.msk.f32.gmra.mxu0 %vm398_vm1, %v4847_v1 }
  0xd2   : > { %4160 = vmatmul.mubr.msk.f32.gmra.mxu1 %vm398_vm1, %v6479_v34  ;;  %4212 = vmatprep.mubr.msk.f32.mxu0 %vm398_vm1, %v4888_v24  ;;  %v6486_v24 = vld [vmem:[#allocation49_spill] sm:$0xff] }
  0xd3   : > { %4162 = vmatprep.mubr.msk.f32.mxu1 %vm398_vm1, %v5081_v37 }
  0xd5   : > { %4213 = vmatmul.mubr.msk.f32.gmra.mxu0 %vm398_vm1, %v4891_v40  ;;  %v6487_v40 = vld [vmem:[#allocation50_spill] sm:$0xff] }
  0xd6   : > { %4163 = vmatmul.mubr.msk.f32.gmra.mxu1 %vm398_vm1, %v6480_v47  ;;  %4215 = vmatprep.mubr.msk.f32.mxu0 %vm398_vm1, %v4620_v5 }
  0xd7   : > { %4165 = vmatprep.mubr.msk.f32.mxu1 %vm398_vm1, %v5098_v4 }
  0xd9   : > { %4216 = vmatmul.mubr.msk.f32.gmra.mxu0 %vm398_vm1, %v4625_v8 }
  0xda   : > { %4166 = vmatmul.mubr.msk.f32.gmra.mxu1 %vm398_vm1, %v6481_v48  ;;  %4218 = vmatprep.mubr.msk.f32.mxu0 %vm398_vm1, %v4646_v19  ;;  %v6483_v19 = vld [vmem:[#allocation46_spill] sm:$0xff] }
  0xdb   : > { %4168 = vmatprep.mubr.msk.f32.mxu1 %vm398_vm1, %v5115_v45 }
  0xdd   : > { %4219 = vmatmul.mubr.msk.f32.gmra.mxu0 %vm398_vm1, %v4649_v20 }
  0xde   : > { %4169 = vmatmul.mubr.msk.f32.gmra.mxu1 %vm398_vm1, %v6482_v55  ;;  %4221 = vmatprep.mubr.msk.f32.mxu0 %vm398_vm1, %v4690_v35 }
  0xdf   : > { %4171 = vmatprep.mubr.msk.f32.mxu1 %vm398_vm1, %v5132_v26 }
  0xe1   : > { %v5481_v5 = vpop.f32.mrf.mxu0  ;;  %4222 = vmatmul.mubr.msk.f32.gmra.mxu0 %vm398_vm1, %v4700_v39 }
  0xe2   : > { %v5485_v8 = vpop.f32.mrf.mxu1  ;;  %4172 = vmatmul.mubr.msk.f32.gmra.mxu1 %vm398_vm1, %v6483_v19  ;;  %4224 = vmatprep.mubr.msk.f32.mxu0 %vm398_vm1, %v4736_v53 }
  0xe3   : > { %v5491_v20 = vpop.f32.mrf.mxu0  ;;  %4174 = vmatprep.mubr.msk.f32.mxu1 %vm398_vm1, %v5149_v42 }
  0xe4   : > { %v5495_v35 = vpop.f32.mrf.mxu1 }
  0xe5   : > { %v5497_v61 = vpop.f32.mrf.mxu0  ;;  %4225 = vmatmul.mubr.msk.f32.gmra.mxu0 %vm398_vm1, %v4739_v54 }
  0xe6   : > { %v5501_v39 = vpop.f32.mrf.mxu1  ;;  %4175 = vmatmul.mubr.msk.f32.gmra.mxu1 %vm398_vm1, %v6484_v25  ;;  %4227 = vmatprep.mubr.msk.f32.mxu0 %vm398_vm1, %v4773_v2 }
  0xe7   : > { %v5507_v53 = vpop.f32.mrf.mxu0  ;;  %4177 = vmatprep.mubr.msk.f32.mxu1 %vm398_vm1, %v6485_v30 }
  0xe8   : > { %v5511_v59 = vpop.f32.mrf.mxu1 }
  0xe9   : > { %v5513_v1 = vpop.f32.mrf.mxu0  ;;  %4228 = vmatmul.mubr.msk.f32.gmra.mxu0 %vm398_vm1, %v4776_v6 }
  0xea   : > { %v5517_v54 = vpop.f32.mrf.mxu1  ;;  %4178 = vmatmul.mubr.msk.f32.gmra.mxu1 %vm398_vm1, %v6486_v24  ;;  %4230 = vmatprep.mubr.msk.f32.mxu0 %vm398_vm1, %v4808_v31 }
  0xeb   : > { %v5523_v2 = vpop.f32.mrf.mxu0  ;;  %4180 = vmatprep.mubr.msk.f32.mxu1 %vm398_vm1, %v6487_v40 }
  0xec   : > { %v5527_v7 = vpop.f32.mrf.mxu1 }
  0xed   : > { %v5529_v44 = vpop.f32.mrf.mxu0  ;;  %4231 = vmatmul.mubr.msk.f32.gmra.mxu0 %vm398_vm1, %v4811_v32 }
  0xee   : > { %v5533_v6 = vpop.f32.mrf.mxu1  ;;  %4181 = vmatmul.mubr.msk.f32.gmra.mxu1 %vm398_vm1, %v6488_v22  ;;  %4233 = vmatprep.mubr.msk.f32.mxu0 %vm398_vm1, %v4852_v11 }
  0xef   : > { %v5539_v31 = vpop.f32.mrf.mxu0  ;;  %4183 = vmatprep.mubr.msk.f32.mxu1 %vm398_vm1, %v5200_v38 }
  0xf0   : > { %v5543_v18 = vpop.f32.mrf.mxu1 }
  0xf1   : > { %v5545_v3 = vpop.f32.mrf.mxu0  ;;  %4234 = vmatmul.mubr.msk.f32.gmra.mxu0 %vm398_vm1, %v6450_v0  ;;  %v1916_v0 = vrot.slane %v5369_v41, 2 }
  0xf2   : > { %v5549_v32 = vpop.f32.mrf.mxu1  ;;  %4184 = vmatmul.mubr.msk.f32.gmra.mxu1 %vm398_vm1, %v5211_v58  ;;  %4236 = vmatprep.mubr.msk.f32.mxu0 %vm398_vm1, %v4896_v51 }
  0xf3   : > { %6489 = vst [vmem:[#allocation13_spill] sm:$0xff] %v5549_v32  ;;  %v5555_v11 = vpop.f32.mrf.mxu0  ;;  %4186 = vmatprep.mubr.msk.f32.mxu1 %vm398_vm1, %v5217_v56  ;;  %v5597_v32 = vld [vmem:[%s4611_s11 + $0x1a0] sm:$0xff] }
  0xf4   : > { %v5560_v27 = vpop.f32.mrf.mxu1 }
  0xf5   : > { %6490 = vst [vmem:[#allocation15_spill] sm:$0xff] %v5560_v27  ;;  %v5563_v62 = vpop.f32.mrf.mxu0  ;;  %4237 = vmatmul.mubr.msk.f32.gmra.mxu0 %vm398_vm1, %v6451_v16  ;;  %v1918_v27 = vrot.slane %v5382_v52, 2  ;;  %v5584_v16 = vsel %vm977_vm2, %v1915_v57, %v1916_v0 }
  0xf6   : > { %v5567_v23 = vpop.f32.mrf.mxu1  ;;  %4187 = vmatmul.mubr.msk.f32.gmra.mxu1 %vm398_vm1, %v5228_v63  ;;  %4239 = vmatprep.mubr.msk.f32.mxu0 %vm398_vm1, %v5366_v29  ;;  %6493 = vst [vmem:[#allocation21_spill] sm:$0xff] %v5584_v16 }
  0xf7   : > { %6491 = vst [vmem:[#allocation17_spill] sm:$0xff] %v5567_v23  ;;  %v5573_v51 = vpop.f32.mrf.mxu0  ;;  %4189 = vmatprep.mubr.msk.f32.mxu1 %vm398_vm1, %v5234_v13  ;;  %v5604_v57 = vsel %vm977_vm2, %v1916_v0, %v1918_v27 }
  0xf8   : > { %v5581_v43 = vpop.f32.mrf.mxu1  ;;  %6495 = vst [vmem:[#allocation41_spill] sm:$0xff] %v5604_v57 }
  0xf9   : > { %6492 = vst [vmem:[#allocation19_spill] sm:$0xff] %v5581_v43  ;;  %v5586_v23 = vpop.f32.mrf.mxu0  ;;  %4240 = vmatmul.mubr.msk.f32.gmra.mxu0 %vm398_vm1, %v5369_v41 }
  0xfa   : > { %v5590_v29 = vpop.f32.mrf.mxu1  ;;  %4190 = vmatmul.mubr.msk.f32.gmra.mxu1 %vm398_vm1, %v5243_v15  ;;  %4242 = vmatprep.mubr.msk.f32.mxu0 %vm398_vm1, %v5578_v36 }
  0xfb   : > { %6494 = vst [vmem:[#allocation26_spill] sm:$0xff] %v5590_v29  ;;  %v5599_v52 = vpop.f32.mrf.mxu0  ;;  %4192 = vmatprep.mubr.msk.f32.mxu1 %vm398_vm1, %v5584_v16 }
  0xfc   : > { %v5606_v43 = vpop.f32.mrf.mxu1 }
  0xfd   : > { %6496 = vst [vmem:[#allocation42_spill] sm:$0xff] %v5606_v43  ;;  %v5608_v41 = vpop.f32.mrf.mxu0  ;;  %4243 = vmatmul.mubr.msk.f32.gmra.mxu0 %vm398_vm1, %v5597_v32 }
  0xfe   : > { %v5612_v29 = vpop.f32.mrf.mxu1  ;;  %4193 = vmatmul.mubr.msk.f32.gmra.mxu1 %vm398_vm1, %v5604_v57  ;;  %4297 = vmatprep.mubr.msk.f32.mxu0 %vm398_vm1, %v5009_v12 }
  0xff   : > { %6497 = vst [vmem:[#allocation43_spill] sm:$0xff] %v5612_v29  ;;  %v5618_v15 = vpop.f32.mrf.mxu0  ;;  %4247 = vmatprep.mubr.msk.f32.mxu1 %vm398_vm1, %v6455_v14 }
 0x100   : > { %v5622_v27 = vpop.f32.mrf.mxu1 }
 0x101   : > { %6498 = vst [vmem:[#allocation44_spill] sm:$0xff] %v5622_v27  ;;  %v3999_v0 = vpop.f32.mrf.mxu0  ;;  %4298 = vmatmul.mubr.msk.f32.vlgmr.msra.gmra.mxu0 %vm398_vm1, %v5024_v21 }
 0x102   : > { %v3949_v43 = vpop.f32.mrf.mxu1  ;;  %4248 = vmatmul.mubr.msk.f32.vlgmr.msra.gmra.mxu1 %vm398_vm1, %v6456_v50  ;;  %4300 = vmatprep.mubr.msk.f32.mxu0 %vm398_vm1, %v5030_v10 }
 0x103   : > { %v824_v12 = vadd.f32 %v3949_v43, %v5481_v5  ;;  %v1190_v29 = vpop.f32.mrf.mxu0  ;;  %4250 = vmatprep.mubr.msk.f32.mxu1 %vm398_vm1, %v6457_v17  ;;  %v6499_v17 = vld [vmem:[#allocation23_spill] sm:$0xff] }
 0x104   : > { %v818_v14 = vpop.f32.mrf.mxu1 }
 0x105   : > { %v5633_v57 = vadd.f32 %v3999_v0, %v824_v12  ;;  %v819_v27 = vadd.f32 %v818_v14, %v5491_v20  ;;  %v4002_v16 = vpop.f32.mrf.mxu0  ;;  %4301 = vmatmul.mubr.msk.f32.gmra.mxu0 %vm398_vm1, %v5041_v60  ;;  %v6501_v14 = vld [vmem:[#allocation31_spill] sm:$0xff] }
 0x106   : > { %v3952_v21 = vpop.f32.mrf.mxu1  ;;  %4251 = vmatmul.mubr.msk.f32.gmra.mxu1 %vm398_vm1, %v6458_v9  ;;  %4303 = vmatprep.mubr.msk.f32.mxu0 %vm398_vm1, %v5047_v49 }
 0x107   : > { %v5642_v43 = vadd.f32 %v1190_v29, %v819_v27  ;;  %v834_v10 = vadd.f32 %v3952_v21, %v5497_v61  ;;  %v1200_v50 = vpop.f32.mrf.mxu0  ;;  %4253 = vmatprep.mubr.msk.f32.mxu1 %vm398_vm1, %v6499_v17 }
 0x108   : > { %v828_v5 = vpop.f32.mrf.mxu1 }
 0x109   : > { %v5647_v20 = vadd.f32 %v4002_v16, %v834_v10  ;;  %v829_v60 = vadd.f32 %v828_v5, %v5507_v53  ;;  %v4005_v0 = vpop.f32.mrf.mxu0  ;;  %4304 = vmatmul.mubr.msk.f32.gmra.mxu0 %vm398_vm1, %v6478_v33  ;;  %v6500_v16 = vld [vmem:[#allocation28_spill] sm:$0xff]  ;;  %v6502_v10 = vld [vmem:[#allocation33_spill] sm:$0xff] }
 0x10a   : > { %v3955_v9 = vpop.f32.mrf.mxu1  ;;  %4254 = vmatmul.mubr.msk.f32.gmra.mxu1 %vm398_vm1, %v6460_v46  ;;  %4306 = vmatprep.mubr.msk.f32.mxu0 %vm398_vm1, %v5064_v28 }
 0x10b   : > { %v5656_v49 = vadd.f32 %v1200_v50, %v829_v60  ;;  %v844_v61 = vadd.f32 %v3955_v9, %v5513_v1  ;;  %v1210_v29 = vpop.f32.mrf.mxu0  ;;  %4256 = vmatprep.mubr.msk.f32.mxu1 %vm398_vm1, %v6500_v16  ;;  %v6503_v60 = vld [vmem:[#allocation35_spill] sm:$0xff]  ;;  %v6504_v9 = vld [vmem:[#allocation37_spill] sm:$0xff] }
 0x10c   : > { %v838_v53 = vpop.f32.mrf.mxu1 }
 0x10d   : > { %v5661_v27 = vadd.f32 %v4005_v0, %v844_v61  ;;  %v839_v33 = vadd.f32 %v838_v53, %v5523_v2  ;;  %v4008_v12 = vpop.f32.mrf.mxu0  ;;  %4307 = vmatmul.mubr.msk.f32.gmra.mxu0 %vm398_vm1, %v6479_v34  ;;  %v6505_v53 = vld [vmem:[#allocation39_spill] sm:$0xff] }
 0x10e   : > { %v3958_v46 = vpop.f32.mrf.mxu1  ;;  %4257 = vmatmul.mubr.msk.f32.gmra.mxu1 %vm398_vm1, %v6501_v14  ;;  %4309 = vmatprep.mubr.msk.f32.mxu0 %vm398_vm1, %v5081_v37 }
 0x10f   : > { %v5670_v28 = vadd.f32 %v1210_v29, %v839_v33  ;;  %v854_v1 = vadd.f32 %v3958_v46, %v5529_v44  ;;  %v1220_v21 = vpop.f32.mrf.mxu0  ;;  %4259 = vmatprep.mubr.msk.f32.mxu1 %vm398_vm1, %v6502_v10 }
 0x110   : > { %v848_v2 = vpop.f32.mrf.mxu1 }
 0x111   : > { %v5675_v50 = vadd.f32 %v4008_v12, %v854_v1  ;;  %v849_v34 = vadd.f32 %v848_v2, %v5539_v31  ;;  %v4011_v17 = vpop.f32.mrf.mxu0  ;;  %4310 = vmatmul.mubr.msk.f32.gmra.mxu0 %vm398_vm1, %v6480_v47  ;;  %v6506_v12 = vld [vmem:[#allocation9_spill] sm:$0xff]  ;;  %v6508_v2 = vld [vmem:[#allocation12_spill] sm:$0xff] }
 0x112   : > { %v3961_v5 = vpop.f32.mrf.mxu1  ;;  %4260 = vmatmul.mubr.msk.f32.gmra.mxu1 %vm398_vm1, %v6503_v60  ;;  %4312 = vmatprep.mubr.msk.f32.mxu0 %vm398_vm1, %v5098_v4  ;;  %v6509_v60 = vld [vmem:[#allocation14_spill] sm:$0xff] }
 0x113   : > { %v5684_v37 = vadd.f32 %v1220_v21, %v849_v34  ;;  %v864_v44 = vadd.f32 %v3961_v5, %v5545_v3  ;;  %v1230_v0 = vpop.f32.mrf.mxu0  ;;  %4262 = vmatprep.mubr.msk.f32.mxu1 %vm398_vm1, %v6504_v9  ;;  %v6507_v21 = vld [vmem:[#allocation10_spill] sm:$0xff] }
 0x114   : > { %v858_v31 = vpop.f32.mrf.mxu1 }
 0x115   : > { %v5689_v61 = vadd.f32 %v4011_v17, %v864_v44  ;;  %v859_v47 = vadd.f32 %v858_v31, %v5555_v11  ;;  %v4014_v29 = vpop.f32.mrf.mxu0  ;;  %4313 = vmatmul.mubr.msk.f32.gmra.mxu0 %vm398_vm1, %v6481_v48 }
 0x116   : > { %v3964_v16 = vpop.f32.mrf.mxu1  ;;  %4263 = vmatmul.mubr.msk.f32.gmra.mxu1 %vm398_vm1, %v6505_v53  ;;  %4315 = vmatprep.mubr.msk.f32.mxu0 %vm398_vm1, %v5115_v45  ;;  %v6512_v53 = vld [vmem:[#allocation20_spill] sm:$0xff] }
 0x117   : > { %v5698_v4 = vadd.f32 %v1230_v0, %v859_v47  ;;  %v874_v3 = vadd.f32 %v3964_v16, %v5563_v62  ;;  %v1240_v33 = vpop.f32.mrf.mxu0  ;;  %4265 = vmatprep.mubr.msk.f32.mxu1 %vm398_vm1, %v6506_v12  ;;  %v6510_v0 = vld [vmem:[#allocation16_spill] sm:$0xff] }
 0x118   : > { %v868_v11 = vpop.f32.mrf.mxu1 }
 0x119   : > { %v5703_v46 = vadd.f32 %v4014_v29, %v874_v3  ;;  %v869_v48 = vadd.f32 %v868_v11, %v5573_v51  ;;  %v4017_v14 = vpop.f32.mrf.mxu0  ;;  %4316 = vmatmul.mubr.msk.f32.gmra.mxu0 %vm398_vm1, %v6482_v55  ;;  %v6511_v29 = vld [vmem:[#allocation18_spill] sm:$0xff] }
 0x11a   : > { %v3967_v1 = vpop.f32.mrf.mxu1  ;;  %4266 = vmatmul.mubr.msk.f32.gmra.mxu1 %vm398_vm1, %v6507_v21  ;;  %4318 = vmatprep.mubr.msk.f32.mxu0 %vm398_vm1, %v5132_v26  ;;  %v6513_v11 = vld [vmem:[#allocation22_spill] sm:$0xff] }
 0x11b   : > { %v5712_v62 = vadd.f32 %v1240_v33, %v869_v48  ;;  %v884_v45 = vadd.f32 %v3967_v1, %v5586_v23  ;;  %v1250_v10 = vpop.f32.mrf.mxu0  ;;  %4268 = vmatprep.mubr.msk.f32.mxu1 %vm398_vm1, %v6508_v2 }
 0x11c   : > { %v878_v51 = vpop.f32.mrf.mxu1 }
 0x11d   : > { %v5717_v34 = vadd.f32 %v4017_v14, %v884_v45  ;;  %v879_v55 = vadd.f32 %v878_v51, %v5599_v52  ;;  %v4020_v17 = vpop.f32.mrf.mxu0  ;;  %4319 = vmatmul.mubr.msk.f32.gmra.mxu0 %vm398_vm1, %v6483_v19  ;;  %v6514_v14 = vld [vmem:[#allocation24_spill] sm:$0xff]  ;;  %v6516_v51 = vld [vmem:[#allocation29_spill] sm:$0xff] }
 0x11e   : > { %v3970_v5 = vpop.f32.mrf.mxu1  ;;  %4269 = vmatmul.mubr.msk.f32.gmra.mxu1 %vm398_vm1, %v6509_v60  ;;  %4321 = vmatprep.mubr.msk.f32.mxu0 %vm398_vm1, %v5149_v42  ;;  %v6517_v60 = vld [vmem:[#allocation32_spill] sm:$0xff] }
 0x11f   : > { %v5726_v26 = vadd.f32 %v1250_v10, %v879_v55  ;;  %v894_v23 = vadd.f32 %v3970_v5, %v5608_v41  ;;  %v1260_v44 = vpop.f32.mrf.mxu0  ;;  %4271 = vmatprep.mubr.msk.f32.mxu1 %vm398_vm1, %v6510_v0  ;;  %v6515_v10 = vld [vmem:[#allocation27_spill] sm:$0xff] }
 0x120   : > { %v888_v52 = vpop.f32.mrf.mxu1 }
 0x121   : > { %v5731_v9 = vadd.f32 %v4020_v17, %v894_v23  ;;  %v889_v19 = vadd.f32 %v888_v52, %v5618_v15  ;;  %v4023_v31 = vpop.f32.mrf.mxu0  ;;  %4322 = vmatmul.mubr.msk.f32.gmra.mxu0 %vm398_vm1, %v6484_v25 }
 0x122   : > { %v3973_v47 = vpop.f32.mrf.mxu1  ;;  %4272 = vmatmul.mubr.msk.f32.gmra.mxu1 %vm398_vm1, %v6511_v29  ;;  %4324 = vmatprep.mubr.msk.f32.mxu0 %vm398_vm1, %v6485_v30  ;;  %v6520_v29 = vld [vmem:[#allocation13_spill] sm:$0xff] }
 0x123   : > { %v5740_v42 = vadd.f32 %v1260_v44, %v889_v19  ;;  %v904_v41 = vadd.f32 %v3973_v47, %v5485_v8  ;;  %v1270_v16 = vpop.f32.mrf.mxu0  ;;  %4274 = vmatprep.mubr.msk.f32.mxu1 %vm398_vm1, %v6512_v53  ;;  %v6518_v44 = vld [vmem:[#allocation34_spill] sm:$0xff]  ;;  %v2449_v53 = vrot.slane %v5578_v36, 1 }
 0x124   : > { %v898_v15 = vpop.f32.mrf.mxu1 }
 0x125   : > { %v5745_v3 = vadd.f32 %v4023_v31, %v904_v41  ;;  %v899_v25 = vadd.f32 %v898_v15, %v5495_v35  ;;  %v4026_v33 = vpop.f32.mrf.mxu0  ;;  %4325 = vmatmul.mubr.msk.f32.gmra.mxu0 %vm398_vm1, %v6486_v24  ;;  %v2718_v31 = vrot.slane %v5597_v32, 2  ;;  %v2450_v15 = vrot.slane %v5597_v32, 1  ;;  %v6526_v32 = vld [vmem:[#allocation17_spill] sm:$0xff] }
 0x126   : > { %v3976_v12 = vpop.f32.mrf.mxu1  ;;  %4275 = vmatmul.mubr.msk.f32.gmra.mxu1 %vm398_vm1, %v6513_v11  ;;  %4327 = vmatprep.mubr.msk.f32.mxu0 %vm398_vm1, %v6487_v40 }
 0x127   : > { %v5754_v8 = vadd.f32 %v1270_v16, %v899_v25  ;;  %v914_v30 = vadd.f32 %v3976_v12, %v5501_v39  ;;  %v1280_v48 = vpop.f32.mrf.mxu0  ;;  %4277 = vmatprep.mubr.msk.f32.mxu1 %vm398_vm1, %v6514_v14  ;;  %v6521_v16 = vld [vmem:[#allocation38_spill] sm:$0xff]  ;;  %v6524_v14 = vld [vmem:[#allocation40_spill] sm:$0xff] }
 0x128   : > { %v908_v35 = vpop.f32.mrf.mxu1 }
 0x129   : > { %v5759_v1 = vadd.f32 %v4026_v33, %v914_v30  ;;  %v909_v24 = vadd.f32 %v908_v35, %v5511_v59  ;;  %v4029_v21 = vpop.f32.mrf.mxu0  ;;  %4328 = vmatmul.mubr.msk.f32.gmra.mxu0 %vm398_vm1, %v6488_v22  ;;  %v6523_v30 = vld [vmem:[#allocation25_spill] sm:$0xff] }
 0x12a   : > { %v3979_v45 = vpop.f32.mrf.mxu1  ;;  %4278 = vmatmul.mubr.msk.f32.gmra.mxu1 %vm398_vm1, %v6515_v10  ;;  %4330 = vmatprep.mubr.msk.f32.mxu0 %vm398_vm1, %v5200_v38  ;;  %v6525_v35 = vld [vmem:[#allocation21_spill] sm:$0xff]  ;;  %v6527_v10 = vld [vmem:[#allocation30_spill] sm:$0xff] }
 0x12b   : > { %v5768_v39 = vadd.f32 %v1280_v48, %v909_v24  ;;  %v924_v40 = vadd.f32 %v3979_v45, %v5517_v54  ;;  %v1290_v2 = vpop.f32.mrf.mxu0  ;;  %4280 = vmatprep.mubr.msk.f32.mxu1 %vm398_vm1, %v6516_v51 }
 0x12c   : > { %v918_v59 = vpop.f32.mrf.mxu1 }
 0x12d   : > { %v5773_v55 = vadd.f32 %v4029_v21, %v924_v40  ;;  %v919_v22 = vadd.f32 %v918_v59, %v5527_v7  ;;  %v4032_v17 = vpop.f32.mrf.mxu0  ;;  %4331 = vmatmul.mubr.msk.f32.gmra.mxu0 %vm398_vm1, %v5211_v58  ;;  %v2451_v59 = vsel %vm315_vm0, %v2449_v53, %v2450_v15 }
 0x12e   : > { %v3982_v5 = vpop.f32.mrf.mxu1  ;;  %4281 = vmatmul.mubr.msk.f32.gmra.mxu1 %vm398_vm1, %v6517_v60  ;;  %4333 = vmatprep.mubr.msk.f32.mxu0 %vm398_vm1, %v5217_v56  ;;  %v6519_v56 = vld [vmem:[#allocation36_spill] sm:$0xff] }
 0x12f   : > { %v5782_v38 = vadd.f32 %v1290_v2, %v919_v22  ;;  %v934_v54 = vadd.f32 %v3982_v5, %v5533_v6  ;;  %v1300_v23 = vpop.f32.mrf.mxu0  ;;  %4283 = vmatprep.mubr.msk.f32.mxu1 %vm398_vm1, %v6518_v44  ;;  %v2717_v6 = vrot.slane %v5578_v36, 2  ;;  %v6530_v44 = vld [vmem:[#allocation11_spill] sm:$0xff] }
 0x130   : > { %v928_v7 = vpop.f32.mrf.mxu1 }
 0x131   : > { %v5787_v0 = vadd.f32 %v4032_v17, %v934_v54  ;;  %v929_v58 = vadd.f32 %v928_v7, %v5543_v18  ;;  %v4035_v52 = vpop.f32.mrf.mxu0  ;;  %4334 = vmatmul.mubr.msk.f32.gmra.mxu0 %vm398_vm1, %v5228_v63  ;;  %v265_v63 = vld [vmem:[%s4611_s11 + $0x1a8] sm:$0x3]  ;;  %v2719_v40 = vsel %vm977_vm2, %v2717_v6, %v2718_v31  ;;  %v6528_v17 = vld [vmem:[#allocation19_spill] sm:$0xff]  ;;  %s3597_s11 = sshll.u32 %s4568_s19, 12 }
 0x132   : > { %v3985_v19 = vpop.f32.mrf.mxu1  ;;  %4284 = vmatmul.mubr.msk.f32.gmra.mxu1 %vm398_vm1, %v6519_v56  ;;  %4336 = vmatprep.mubr.msk.f32.mxu0 %vm398_vm1, %v5234_v13  ;;  %v6522_v13 = vld [vmem:[#allocation15_spill] sm:$0xff]  ;;  %v2720_v24 = vrot.slane %v265_v63, 2  ;;  %v2452_v2 = vrot.slane %v265_v63, 1  ;;  %v6529_v54 = vld [vmem:[#allocation41_spill] sm:$0xff]  ;;  %s6204_s22 = scalar_lea.hbm %s6320_s2, %s3597_s11 }
 0x133   : > { %v5798_v47 = vadd.f32 %v1300_v23, %v929_v58  ;;  %v944_v41 = vadd.f32 %v3985_v19, %v6520_v29  ;;  %v1310_v18 = vpop.f32.mrf.mxu0  ;;  %4286 = vmatprep.mubr.msk.f32.mxu1 %vm398_vm1, %v6521_v16 }
 0x134   : > { %v938_v25 = vpop.f32.mrf.mxu1  ;;  %v2721_v7 = vsel %vm977_vm2, %v2718_v31, %v2720_v24  ;;  %v2453_v6 = vsel %vm315_vm0, %v2450_v15, %v2452_v2  ;;  %v6534_v15 = vld [vmem:[#allocation44_spill] sm:$0xff] }
 0x135   : > { %v5806_v33 = vadd.f32 %v4035_v52, %v944_v41  ;;  %v939_v12 = vadd.f32 %v938_v25, %v6522_v13  ;;  %v4038_v11 = vpop.f32.mrf.mxu0  ;;  %4337 = vmatmul.mubr.msk.f32.gmra.mxu0 %vm398_vm1, %v6523_v30  ;;  %v6531_v52 = vld [vmem:[#allocation26_spill] sm:$0xff]  ;;  %v6533_v25 = vld [vmem:[#allocation43_spill] sm:$0xff] }
 0x136   : > { %v3988_v48 = vpop.f32.mrf.mxu1  ;;  %4287 = vmatmul.mubr.msk.f32.gmra.mxu1 %vm398_vm1, %v6524_v14  ;;  %4339 = vmatprep.mubr.msk.f32.mxu0 %vm398_vm1, %v6525_v35 }
 0x137   : > { %v5815_v36 = vadd.f32 %v1310_v18, %v939_v12  ;;  %v954_v21 = vadd.f32 %v3988_v48, %v6526_v32  ;;  %v1320_v45 = vpop.f32.mrf.mxu0  ;;  %4289 = vmatprep.mubr.msk.f32.mxu1 %vm398_vm1, %v6527_v10  ;;  %v6532_v18 = vld [vmem:[#allocation42_spill] sm:$0xff] }
 0x138   : > { %v948_v51 = vpop.f32.mrf.mxu1 }
 0x139   : > { %v5822_v22 = vadd.f32 %v4038_v11, %v954_v21  ;;  %v949_v5 = vadd.f32 %v948_v51, %v6528_v17  ;;  %v4041_v60 = vpop.f32.mrf.mxu0  ;;  %4340 = vmatmul.mubr.msk.f32.gmra.mxu0 %vm398_vm1, %v6529_v54 }
 0x13a   : > { %v3991_v23 = vpop.f32.mrf.mxu1  ;;  %4290 = vmatmul.mubr.msk.f32.gmra.mxu1 %vm398_vm1, %v6530_v44  ;;  %4342 = vmatprep.mubr.msk.f32.mxu0 %vm398_vm1, %v2719_v40 }
 0x13b   : > { %v5831_v58 = vadd.f32 %v1320_v45, %v949_v5  ;;  %v964_v19 = vadd.f32 %v3991_v23, %v6531_v52  ;;  %v1330_v56 = vpop.f32.mrf.mxu0  ;;  %4292 = vmatprep.mubr.msk.f32.mxu1 %vm398_vm1, %v2451_v59 }
 0x13c   : > { %v958_v29 = vpop.f32.mrf.mxu1 }
 0x13d   : > { %v5836_v41 = vadd.f32 %v4041_v60, %v964_v19  ;;  %v959_v16 = vadd.f32 %v958_v29, %v6532_v18  ;;  %v4044_v63 = vpop.f32.mrf.mxu0  ;;  %4343 = vmatmul.mubr.msk.f32.gmra.mxu0 %vm398_vm1, %v2721_v7 }
 0x13e   : > { %v3994_v53 = vpop.f32.mrf.mxu1  ;;  %4293 = vmatmul.mubr.msk.f32.gmra.mxu1 %vm398_vm1, %v2453_v6 }
 0x13f   : > { %v5841_v31 = vadd.f32 %v1330_v56, %v959_v16  ;;  %v974_v13 = vadd.f32 %v3994_v53, %v6533_v25  ;;  %v1340_v12 = vpop.f32.mrf.mxu0 }
 0x140   : > { %v968_v11 = vpop.f32.mrf.mxu1 }
 0x141   : > { %v5844_v30 = vadd.f32 %v4044_v63, %v974_v13  ;;  %v969_v48 = vadd.f32 %v968_v11, %v6534_v15  ;;  %v4099_v14 = vpop.f32.mrf.mxu0 }
 0x142   : > { %v4049_v35 = vpop.f32.mrf.mxu1 }
 0x143   : > { %v5847_v24 = vadd.f32 %v1340_v12, %v969_v48  ;;  %v1615_v32 = vadd.f32 %v4049_v35, %v5633_v57  ;;  %v1724_v21 = vpop.f32.mrf.mxu0 }
 0x144   : > { %v1455_v45 = vpop.f32.mrf.mxu1 }
 0x145   : > { %v5850_v10 = vadd.f32 %v4099_v14, %v1615_v32  ;;  %v1614_v40 = vadd.f32 %v1455_v45, %v5642_v43  ;;  %v4102_v2 = vpop.f32.mrf.mxu0 }
 0x146   : > { %v4052_v51 = vpop.f32.mrf.mxu1 }
 0x147   : > { %v5853_v59 = vadd.f32 %v1724_v21, %v1614_v40  ;;  %v1617_v17 = vadd.f32 %v4052_v51, %v5647_v20  ;;  %v1734_v5 = vpop.f32.mrf.mxu0 }
 0x148   : > { %v1465_v60 = vpop.f32.mrf.mxu1 }
 0x149   : > { %v5856_v54 = vadd.f32 %v4102_v2, %v1617_v17  ;;  %v1616_v23 = vadd.f32 %v1465_v60, %v5656_v49  ;;  %v4105_v44 = vpop.f32.mrf.mxu0 }
 0x14a   : > { %v4055_v57 = vpop.f32.mrf.mxu1 }
 0x14b   : > { %v5859_v7 = vadd.f32 %v1734_v5, %v1616_v23  ;;  %v1619_v52 = vadd.f32 %v4055_v57, %v5661_v27  ;;  %v1744_v19 = vpop.f32.mrf.mxu0 }
 0x14c   : > { %v1475_v43 = vpop.f32.mrf.mxu1 }
 0x14d   : > { %v5862_v56 = vadd.f32 %v4105_v44, %v1619_v52  ;;  %v1618_v6 = vadd.f32 %v1475_v43, %v5670_v28  ;;  %v4108_v29 = vpop.f32.mrf.mxu0 }
 0x14e   : > { %v4058_v20 = vpop.f32.mrf.mxu1 }
 0x14f   : > { %v5865_v18 = vadd.f32 %v1744_v19, %v1618_v6  ;;  %v1621_v16 = vadd.f32 %v4058_v20, %v5675_v50  ;;  %v1754_v63 = vpop.f32.mrf.mxu0 }
 0x150   : > { %v1485_v49 = vpop.f32.mrf.mxu1 }
 0x151   : > { %v5868_v53 = vadd.f32 %v4108_v29, %v1621_v16  ;;  %v1620_v25 = vadd.f32 %v1485_v49, %v5684_v37  ;;  %v4111_v13 = vpop.f32.mrf.mxu0 }
 0x152   : > { %v4061_v27 = vpop.f32.mrf.mxu1 }
 0x153   : > { %v5871_v12 = vadd.f32 %v1754_v63, %v1620_v25  ;;  %v1623_v11 = vadd.f32 %v4061_v27, %v5689_v61  ;;  %v1764_v15 = vpop.f32.mrf.mxu0 }
 0x154   : > { %v1495_v28 = vpop.f32.mrf.mxu1 }
 0x155   : > { %v5874_v48 = vadd.f32 %v4111_v13, %v1623_v11  ;;  %v1622_v14 = vadd.f32 %v1495_v28, %v5698_v4  ;;  %v4114_v35 = vpop.f32.mrf.mxu0 }
 0x156   : > { %v4064_v50 = vpop.f32.mrf.mxu1 }
 0x157   : > { %v5877_v32 = vadd.f32 %v1764_v15, %v1622_v14  ;;  %v1625_v21 = vadd.f32 %v4064_v50, %v5703_v46  ;;  %v1774_v45 = vpop.f32.mrf.mxu0 }
 0x158   : > { %v1505_v37 = vpop.f32.mrf.mxu1 }
 0x159   : > { %v5880_v40 = vadd.f32 %v4114_v35, %v1625_v21  ;;  %v1624_v2 = vadd.f32 %v1505_v37, %v5712_v62  ;;  %v4117_v51 = vpop.f32.mrf.mxu0 }
 0x15a   : > { %v4067_v61 = vpop.f32.mrf.mxu1 }
 0x15b   : > { %v5883_v17 = vadd.f32 %v1774_v45, %v1624_v2  ;;  %v1627_v5 = vadd.f32 %v4067_v61, %v5717_v34  ;;  %v1784_v60 = vpop.f32.mrf.mxu0 }
 0x15c   : > { %v1515_v4 = vpop.f32.mrf.mxu1 }
 0x15d   : > { %v5886_v23 = vadd.f32 %v4117_v51, %v1627_v5  ;;  %v1626_v44 = vadd.f32 %v1515_v4, %v5726_v26  ;;  %v4120_v57 = vpop.f32.mrf.mxu0 }
 0x15e   : > { %v4070_v46 = vpop.f32.mrf.mxu1 }
 0x15f   : > { %v5889_v52 = vadd.f32 %v1784_v60, %v1626_v44  ;;  %v1629_v19 = vadd.f32 %v4070_v46, %v5731_v9  ;;  %v1794_v43 = vpop.f32.mrf.mxu0 }
 0x160   : > { %v1525_v62 = vpop.f32.mrf.mxu1 }
 0x161   : > { %v5892_v6 = vadd.f32 %v4120_v57, %v1629_v19  ;;  %v1628_v29 = vadd.f32 %v1525_v62, %v5740_v42  ;;  %v4123_v20 = vpop.f32.mrf.mxu0 }
 0x162   : > { %v4073_v34 = vpop.f32.mrf.mxu1 }
 0x163   : > { %v5895_v16 = vadd.f32 %v1794_v43, %v1628_v29  ;;  %v1631_v63 = vadd.f32 %v4073_v34, %v5745_v3  ;;  %v1804_v49 = vpop.f32.mrf.mxu0 }
 0x164   : > { %v1535_v26 = vpop.f32.mrf.mxu1 }
 0x165   : > { %v5898_v25 = vadd.f32 %v4123_v20, %v1631_v63  ;;  %v1630_v13 = vadd.f32 %v1535_v26, %v5754_v8  ;;  %v4126_v27 = vpop.f32.mrf.mxu0 }
 0x166   : > { %v4076_v9 = vpop.f32.mrf.mxu1 }
 0x167   : > { %v5901_v11 = vadd.f32 %v1804_v49, %v1630_v13  ;;  %v1633_v15 = vadd.f32 %v4076_v9, %v5759_v1  ;;  %v1814_v28 = vpop.f32.mrf.mxu0 }
 0x168   : > { %v1545_v42 = vpop.f32.mrf.mxu1 }
 0x169   : > { %v5904_v14 = vadd.f32 %v4126_v27, %v1633_v15  ;;  %v1632_v35 = vadd.f32 %v1545_v42, %v5768_v39  ;;  %v4129_v50 = vpop.f32.mrf.mxu0 }
 0x16a   : > { %v4079_v3 = vpop.f32.mrf.mxu1 }
 0x16b   : > { %6535 = vst [vmem:[#allocation45_spill] sm:$0xff] %v5904_v14  ;;  %v5907_v21 = vadd.f32 %v1814_v28, %v1632_v35  ;;  %v1635_v45 = vadd.f32 %v4079_v3, %v5773_v55  ;;  %v1824_v37 = vpop.f32.mrf.mxu0 }
 0x16c   : > { %v1555_v8 = vpop.f32.mrf.mxu1 }
 0x16d   : > { %6536 = vst [vmem:[#allocation46_spill] sm:$0xff] %v5907_v21  ;;  %v5910_v2 = vadd.f32 %v4129_v50, %v1635_v45  ;;  %v1634_v51 = vadd.f32 %v1555_v8, %v5782_v38  ;;  %v4132_v61 = vpop.f32.mrf.mxu0 }
 0x16e   : > { %v4082_v1 = vpop.f32.mrf.mxu1 }
 0x16f   : > { %6537 = vst [vmem:[#allocation47_spill] sm:$0xff] %v5910_v2  ;;  %v5913_v5 = vadd.f32 %v1824_v37, %v1634_v51  ;;  %v1637_v60 = vadd.f32 %v4082_v1, %v5787_v0  ;;  %v1834_v4 = vpop.f32.mrf.mxu0 }
 0x170   : > { %v1565_v39 = vpop.f32.mrf.mxu1 }
 0x171   : > { %6538 = vst [vmem:[#allocation48_spill] sm:$0xff] %v5913_v5  ;;  %v5916_v44 = vadd.f32 %v4132_v61, %v1637_v60  ;;  %v1636_v57 = vadd.f32 %v1565_v39, %v5798_v47  ;;  %v4135_v46 = vpop.f32.mrf.mxu0 }
 0x172   : > { %v4085_v55 = vpop.f32.mrf.mxu1 }
 0x173   : > { %6539 = vst [vmem:[#allocation49_spill] sm:$0xff] %v5916_v44  ;;  %v5919_v19 = vadd.f32 %v1834_v4, %v1636_v57  ;;  %v1639_v43 = vadd.f32 %v4085_v55, %v5806_v33  ;;  %v1844_v62 = vpop.f32.mrf.mxu0 }
 0x174   : > { %v1575_v38 = vpop.f32.mrf.mxu1 }
 0x175   : > { %6540 = vst [vmem:[#allocation50_spill] sm:$0xff] %v5919_v19  ;;  %v5922_v29 = vadd.f32 %v4135_v46, %v1639_v43  ;;  %v1638_v20 = vadd.f32 %v1575_v38, %v5815_v36  ;;  %v4138_v34 = vpop.f32.mrf.mxu0 }
 0x176   : > { %v4088_v0 = vpop.f32.mrf.mxu1 }
 0x177   : > { %6541 = vst [vmem:[#allocation51_spill] sm:$0xff] %v5922_v29  ;;  %v5925_v63 = vadd.f32 %v1844_v62, %v1638_v20  ;;  %v1641_v49 = vadd.f32 %v4088_v0, %v5822_v22  ;;  %v1854_v26 = vpop.f32.mrf.mxu0 }
 0x178   : > { %v1585_v47 = vpop.f32.mrf.mxu1 }
 0x179   : > { %6542 = vst [vmem:[#allocation23_spill] sm:$0xff] %v5925_v63  ;;  %v5928_v13 = vadd.f32 %v4138_v34, %v1641_v49  ;;  %v1640_v27 = vadd.f32 %v1585_v47, %v5831_v58  ;;  %v4141_v9 = vpop.f32.mrf.mxu0 }
 0x17a   : > { %v4091_v33 = vpop.f32.mrf.mxu1 }
 0x17b   : > { %6543 = vst [vmem:[#allocation28_spill] sm:$0xff] %v5928_v13  ;;  %v5931_v15 = vadd.f32 %v1854_v26, %v1640_v27  ;;  %v1643_v28 = vadd.f32 %v4091_v33, %v5836_v41  ;;  %v1864_v42 = vpop.f32.mrf.mxu0 }
 0x17c   : > { %v1595_v36 = vpop.f32.mrf.mxu1 }
 0x17d   : > { %6544 = vst [vmem:[#allocation31_spill] sm:$0xff] %v5931_v15  ;;  %v5934_v35 = vadd.f32 %v4141_v9, %v1643_v28  ;;  %v1642_v50 = vadd.f32 %v1595_v36, %v5841_v31  ;;  %v4144_v3 = vpop.f32.mrf.mxu0 }
 0x17e   : > { %v4094_v22 = vpop.f32.mrf.mxu1 }
 0x17f   : > { %6545 = vst [vmem:[#allocation33_spill] sm:$0xff] %v5934_v35  ;;  %v5937_v45 = vadd.f32 %v1864_v42, %v1642_v50  ;;  %v1645_v37 = vadd.f32 %v4094_v22, %v5844_v30  ;;  %v1874_v8 = vpop.f32.mrf.mxu0 }
 0x180   : > { %v1605_v58 = vpop.f32.mrf.mxu1 }
 0x181   : > { %6546 = vst [vmem:[#allocation35_spill] sm:$0xff] %v5937_v45  ;;  %v5940_v51 = vadd.f32 %v4144_v3, %v1645_v37  ;;  %v1644_v61 = vadd.f32 %v1605_v58, %v5847_v24  ;;  %v5943_v1 = vpop.f32.mrf.mxu0 }
 0x182   : > { %v4149_v41 = vpop.f32.mrf.mxu1 }
 0x183   : > { %6547 = vst [vmem:[#allocation37_spill] sm:$0xff] %v5940_v51  ;;  %v5945_v60 = vadd.f32 %v1874_v8, %v1644_v61  ;;  %v5947_v4 = vpop.f32.mrf.mxu0 }
 0x184   : > { %v1992_v31 = vpop.f32.mrf.mxu1 }
 0x185   : > { %6548 = vst [vmem:[#allocation39_spill] sm:$0xff] %v5945_v60  ;;  %v5949_v39 = vpop.f32.mrf.mxu0 }
 0x186   : > { %v5951_v57 = vpop.f32.mrf.mxu1 }
 0x187   : > { %v5953_v46 = vpop.f32.mrf.mxu0 }
 0x188   : > { %v5955_v30 = vpop.f32.mrf.mxu1 }
 0x189   : > { %v5957_v55 = vpop.f32.mrf.mxu0 }
 0x18a   : > { %v5959_v43 = vpop.f32.mrf.mxu1 }
 0x18b   : > { %v5961_v24 = vpop.f32.mrf.mxu0 }
 0x18c   : > { %v5963_v62 = vpop.f32.mrf.mxu1 }
 0x18d   : > { %v5965_v38 = vpop.f32.mrf.mxu0 }
 0x18e   : > { %v5967_v20 = vpop.f32.mrf.mxu1 }
 0x18f   : > { %v5969_v34 = vpop.f32.mrf.mxu0 }
 0x190   : > { %v5971_v0 = vpop.f32.mrf.mxu1 }
 0x191   : > { %v5973_v49 = vpop.f32.mrf.mxu0 }
 0x192   : > { %v5975_v26 = vpop.f32.mrf.mxu1 }
 0x193   : > { %v5977_v47 = vpop.f32.mrf.mxu0 }
 0x194   : > { %v5979_v27 = vpop.f32.mrf.mxu1 }
 0x195   : > { %v5981_v9 = vpop.f32.mrf.mxu0 }
 0x196   : > { %v5983_v33 = vpop.f32.mrf.mxu1 }
 0x197   : > { %v5985_v28 = vpop.f32.mrf.mxu0 }
 0x198   : > { %v5987_v42 = vpop.f32.mrf.mxu1 }
 0x199   : > { %v5989_v36 = vpop.f32.mrf.mxu0 }
 0x19a   : > { %v5991_v50 = vpop.f32.mrf.mxu1 }
 0x19b   : > { %v5993_v3 = vpop.f32.mrf.mxu0 }
 0x19c   : > { %v5995_v22 = vpop.f32.mrf.mxu1 }
 0x19d   : > { %v5997_v37 = vpop.f32.mrf.mxu0 }
 0x19e   : > { %v5999_v8 = vpop.f32.mrf.mxu1 }
 0x19f   : > { %v6001_v58 = vpop.f32.mrf.mxu0 }
 0x1a0   : > { %v6003_v61 = vpop.f32.mrf.mxu1 }
 0x1a1   : > { %v6005_v60 = vpop.f32.mrf.mxu0 }
 0x1a2   : > { %v6007_v51 = vpop.f32.mrf.mxu1 }
 0x1a3   : > { %v6009_v45 = vpop.f32.mrf.mxu0 }
 0x1a4   : > { %6549 = vst [vmem:[#allocation9_spill] sm:$0xff] %v6009_v45  ;;  %v6011_v35 = vpop.f32.mrf.mxu1 }
 0x1a5   : > { %v6013_v15 = vpop.f32.mrf.mxu0 }
 0x1a6   : > { %6550 = vst [vmem:[#allocation10_spill] sm:$0xff] %v6013_v15  ;;  %v6015_v13 = vpop.f32.mrf.mxu1 }
 0x1a7   : > { %6551 = vst [vmem:[#allocation12_spill] sm:$0xff] %v6015_v13  ;;  %v6017_v63 = vpop.f32.mrf.mxu0 }
 0x1a8   : > { %6552 = vst [vmem:[#allocation14_spill] sm:$0xff] %v6017_v63  ;;  %v6019_v29 = vpop.f32.mrf.mxu1 }
 0x1a9   : > { %6553 = vst [vmem:[#allocation16_spill] sm:$0xff] %v6019_v29  ;;  %v6021_v19 = vpop.f32.mrf.mxu0 }
 0x1aa   : > { %6554 = vst [vmem:[#allocation18_spill] sm:$0xff] %v6021_v19  ;;  %v6023_v44 = vpop.f32.mrf.mxu1 }
 0x1ab   : > { %6555 = vst [vmem:[#allocation20_spill] sm:$0xff] %v6023_v44  ;;  %v6025_v5 = vpop.f32.mrf.mxu0 }
 0x1ac   : > { %6556 = vst [vmem:[#allocation22_spill] sm:$0xff] %v6025_v5  ;;  %v6027_v2 = vpop.f32.mrf.mxu1 }
 0x1ad   : > { %6557 = vst [vmem:[#allocation24_spill] sm:$0xff] %v6027_v2  ;;  %v6029_v21 = vpop.f32.mrf.mxu0 }
 0x1ae   : > { %6558 = vst [vmem:[#allocation27_spill] sm:$0xff] %v6029_v21  ;;  %v6031_v45 = vpop.f32.mrf.mxu1 }
 0x1af   : > { %6559 = vst [vmem:[#allocation29_spill] sm:$0xff] %v6031_v45  ;;  %v6033_v14 = vpop.f32.mrf.mxu0 }
 0x1b0   : > { %6560 = vst [vmem:[#allocation32_spill] sm:$0xff] %v6033_v14  ;;  %v6035_v15 = vpop.f32.mrf.mxu1 }
 0x1b1   : > { %6561 = vst [vmem:[#allocation34_spill] sm:$0xff] %v6035_v15  ;;  %v6037_v63 = vpop.f32.mrf.mxu0 }
 0x1b2   : > { %6562 = vst [vmem:[#allocation36_spill] sm:$0xff] %v6037_v63  ;;  %v6039_v29 = vpop.f32.mrf.mxu1 }
 0x1b3   : > { %6563 = vst [vmem:[#allocation13_spill] sm:$0xff] %v6039_v29  ;;  %v6041_v19 = vpop.f32.mrf.mxu0 }
 0x1b4   : > { %6564 = vst [vmem:[#allocation38_spill] sm:$0xff] %v6041_v19  ;;  %v6043_v44 = vpop.f32.mrf.mxu1  ;;  %v2152_v19 = vadd.f32 %v4149_v41, %v5850_v10 }
 0x1b5   : > { %6565 = vst [vmem:[#allocation15_spill] sm:$0xff] %v6043_v44  ;;  %v6045_v5 = vpop.f32.mrf.mxu0 }
 0x1b6   : > { %6566 = vst [vmem:[#allocation25_spill] sm:$0xff] %v6045_v5  ;;  %v6047_v2 = vpop.f32.mrf.mxu1 }
 0x1b7   : > { %v6049_v21 = vpop.f32.mrf.mxu0 }
 0x1b8   : > { %6567 = vst [vmem:[#allocation40_spill] sm:$0xff] %v6049_v21  ;;  %v6051_v45 = vpop.f32.mrf.mxu1  ;;  %v2151_v21 = vadd.f32 %v1992_v31, %v5853_v59  ;;  %v2156_v59 = vadd.f32 %v5959_v43, %v5862_v56 }
 0x1b9   : > { %6568 = vst [vmem:[#allocation21_spill] sm:$0xff] %v6051_v45  ;;  %v6053_v14 = vpop.f32.mrf.mxu0 }
 0x1ba   : > { %6569 = vst [vmem:[#allocation17_spill] sm:$0xff] %v6053_v14  ;;  %v6055_v15 = vpop.f32.mrf.mxu1 }
 0x1bb   : > { %6570 = vst [vmem:[#allocation30_spill] sm:$0xff] %v6055_v15  ;;  %v6057_v13 = vpop.f32.mrf.mxu0  ;;  %v2417_v15 = vadd.f32 %v5943_v1, %v2152_v19 }
 0x1bc   : > { %6571 = vst [vmem:[#allocation19_spill] sm:$0xff] %v6057_v13  ;;  %v6059_v63 = vpop.f32.mrf.mxu1  ;;  %v2154_v13 = vadd.f32 %v5951_v57, %v5856_v54 }
 0x1bd   : > { %6572 = vst [vmem:[#allocation41_spill] sm:$0xff] %v6059_v63  ;;  %v6062_v29 = vpop.f32.mrf.mxu0 }
 0x1be   : > { %6573 = vst [vmem:[#allocation11_spill] sm:$0xff] %v6062_v29  ;;  %v6064_v44 = vpop.f32.mrf.mxu1  ;;  %v2416_v29 = vadd.f32 %v5947_v4, %v2151_v21  ;;  %v2155_v21 = vadd.f32 %v5963_v62, %v5865_v18 }
 0x1bf   : > { %6574 = vst [vmem:[#allocation26_spill] sm:$0xff] %v6064_v44  ;;  %v6070_v5 = vpop.f32.mrf.mxu0  ;;  %v2153_v44 = vadd.f32 %v5955_v30, %v5859_v7  ;;  %v2158_v30 = vadd.f32 %v5967_v20, %v5868_v53 }
 0x1c0   : > { %6575 = vst [vmem:[#allocation42_spill] sm:$0xff] %v6070_v5  ;;  %v6072_v14 = vpop.f32.mrf.mxu1  ;;  %v2419_v5 = vadd.f32 %v5949_v39, %v2154_v13  ;;  %v2421_v13 = vadd.f32 %v5957_v55, %v2156_v59  ;;  %v2420_v43 = vadd.f32 %v5961_v24, %v2155_v21 }
 0x1c1   : > { %6576 = vst [vmem:[#allocation43_spill] sm:$0xff] %v6072_v14  ;;  %v4299_v10 = vpop.f32.mrf.mxu0  ;;  %v2418_v57 = vadd.f32 %v5953_v46, %v2153_v44 }
 0x1c2   : > { %v4249_v41 = vpop.f32.mrf.mxu1 }
 0x1c3   : > { %v2686_v63 = vadd.f32 %v4249_v41, %v2417_v15  ;;  %v2794_v45 = vpop.f32.mrf.mxu0 }
 0x1c4   : > { %v2526_v31 = vpop.f32.mrf.mxu1 }
 0x1c5   : > { %v2954_v19 = vadd.f32 %v4299_v10, %v2686_v63  ;;  %v2685_v1 = vadd.f32 %v2526_v31, %v2416_v29  ;;  %v4302_v14 = vpop.f32.mrf.mxu0 }
 0x1c6   : > { %v4252_v54 = vpop.f32.mrf.mxu1 }
 0x1c7   : > { %2986 = vst [vmem:[%s6087_s10 + $0x8] sm:$0xff] %v2954_v19  ;;  %v2953_v7 = vadd.f32 %v2794_v45, %v2685_v1  ;;  %v2688_v15 = vadd.f32 %v4252_v54, %v2419_v5  ;;  %v2804_v56 = vpop.f32.mrf.mxu0  ;;  %v3056_v63 = vmul.f32 %v2954_v19, %v2954_v19  ;;  %v2157_v45 = vadd.f32 %v5971_v0, %v5871_v12 }
 0x1c8   : > { %v2536_v29 = vpop.f32.mrf.mxu1  ;;  %v2423_v0 = vadd.f32 %v5965_v38, %v2158_v30 }
 0x1c9   : > { %2985 = vst [vmem:[%s6087_s10] sm:$0xff] %v2953_v7  ;;  %v3017_v4 = vadd.f32 %v2954_v19, %v2953_v7  ;;  %v3055_v44 = vmul.f32 %v2953_v7, %v2953_v7  ;;  %v2956_v39 = vadd.f32 %v4302_v14, %v2688_v15  ;;  %v2687_v46 = vadd.f32 %v2536_v29, %v2418_v57  ;;  %v4305_v18 = vpop.f32.mrf.mxu0 }
 0x1ca   : > { %v4255_v5 = vpop.f32.mrf.mxu1  ;;  %v2160_v14 = vadd.f32 %v5975_v26, %v5874_v48  ;;  %v2422_v24 = vadd.f32 %v5969_v34, %v2157_v45  ;;  %v2159_v26 = vadd.f32 %v5979_v27, %v5877_v32 }
 0x1cb   : > { %v3087_v62 = vadd.f32 %v3056_v63, %v3055_v44  ;;  %2988 = vst [vmem:[%s6087_s10 + $0x18] sm:$0xff] %v2956_v39  ;;  %v2955_v55 = vadd.f32 %v2804_v56, %v2687_v46  ;;  %v2690_v10 = vadd.f32 %v4255_v5, %v2421_v13  ;;  %v2814_v41 = vpop.f32.mrf.mxu0  ;;  %v3058_v54 = vmul.f32 %v2956_v39, %v2956_v39 }
 0x1cc   : > { %v2546_v59 = vpop.f32.mrf.mxu1  ;;  %v2425_v48 = vadd.f32 %v5973_v49, %v2160_v14  ;;  %v2162_v56 = vadd.f32 %v5983_v33, %v5880_v40  ;;  %v2424_v45 = vadd.f32 %v5977_v47, %v2159_v26 }
 0x1cd   : > { %2987 = vst [vmem:[%s6087_s10 + $0x10] sm:$0xff] %v2955_v55  ;;  %v3018_v31 = vadd.f32 %v3017_v4, %v2955_v55  ;;  %v3057_v19 = vmul.f32 %v2955_v55, %v2955_v55  ;;  %v2958_v53 = vadd.f32 %v4305_v18, %v2690_v10  ;;  %v2689_v20 = vadd.f32 %v2546_v59, %v2420_v43  ;;  %v4308_v12 = vpop.f32.mrf.mxu0 }
 0x1ce   : > { %v4258_v1 = vpop.f32.mrf.mxu1  ;;  %v2427_v5 = vadd.f32 %v5981_v9, %v2162_v56  ;;  %v2164_v43 = vadd.f32 %v5991_v50, %v5886_v23  ;;  %v2163_v59 = vadd.f32 %v5995_v22, %v5889_v52 }
 0x1cf   : > { %v3088_v57 = vadd.f32 %v3087_v62, %v3057_v19  ;;  %2990 = vst [vmem:[%s6087_s10 + $0x28] sm:$0xff] %v2958_v53  ;;  %v2957_v21 = vadd.f32 %v2814_v41, %v2689_v20  ;;  %v3019_v7 = vadd.f32 %v3018_v31, %v2956_v39  ;;  %v2824_v15 = vpop.f32.mrf.mxu0  ;;  %v2692_v13 = vadd.f32 %v4258_v1, %v2423_v0 }
 0x1d0   : > { %v2556_v63 = vpop.f32.mrf.mxu1  ;;  %v2161_v39 = vadd.f32 %v5987_v42, %v5883_v17  ;;  %v3060_v49 = vmul.f32 %v2958_v53, %v2958_v53  ;;  %v2429_v20 = vadd.f32 %v5989_v36, %v2164_v43 }
 0x1d1   : > { %2989 = vst [vmem:[%s6087_s10 + $0x20] sm:$0xff] %v2957_v21  ;;  %v3020_v38 = vadd.f32 %v3019_v7, %v2957_v21  ;;  %v3059_v34 = vmul.f32 %v2957_v21, %v2957_v21  ;;  %v3089_v29 = vadd.f32 %v3088_v57, %v3058_v54  ;;  %v2691_v4 = vadd.f32 %v2556_v63, %v2422_v24  ;;  %v4311_v44 = vpop.f32.mrf.mxu0 }
 0x1d2   : > { %v2960_v46 = vadd.f32 %v4308_v12, %v2692_v13  ;;  %v4261_v18 = vpop.f32.mrf.mxu1  ;;  %v2426_v14 = vadd.f32 %v5985_v28, %v2161_v39  ;;  %v2166_v28 = vadd.f32 %v5999_v8, %v5892_v6  ;;  %v2428_v7 = vadd.f32 %v5993_v3, %v2163_v59 }
 0x1d3   : > { %v3090_v32 = vadd.f32 %v3089_v29, %v3059_v34  ;;  %v2959_v27 = vadd.f32 %v2824_v15, %v2691_v4  ;;  %v3021_v30 = vadd.f32 %v3020_v38, %v2958_v53  ;;  %v2694_v40 = vadd.f32 %v4261_v18, %v2425_v48  ;;  %v2834_v33 = vpop.f32.mrf.mxu0 }
 0x1d4   : > { %2992 = vst [vmem:[%s6087_s10 + $0x38] sm:$0xff] %v2960_v46  ;;  %v2566_v62 = vpop.f32.mrf.mxu1  ;;  %v3062_v31 = vmul.f32 %v2960_v46, %v2960_v46  ;;  %v2165_v15 = vadd.f32 %v6003_v61, %v5895_v16  ;;  %v2168_v6 = vadd.f32 %v6007_v51, %v5898_v25  ;;  %v2431_v38 = vadd.f32 %v5997_v37, %v2166_v28 }
 0x1d5   : > { %2991 = vst [vmem:[%s6087_s10 + $0x30] sm:$0xff] %v2959_v27  ;;  %v3022_v17 = vadd.f32 %v3021_v30, %v2959_v27  ;;  %v3061_v42 = vmul.f32 %v2959_v27, %v2959_v27  ;;  %v3091_v55 = vadd.f32 %v3090_v32, %v3060_v49  ;;  %v2962_v10 = vadd.f32 %v4311_v44, %v2694_v40  ;;  %v4314_v41 = vpop.f32.mrf.mxu0  ;;  %v6577_v40 = vld [vmem:[#allocation45_spill] sm:$0xff] }
 0x1d6   : > { %v2693_v47 = vadd.f32 %v2566_v62, %v2424_v45  ;;  %v4264_v9 = vpop.f32.mrf.mxu1  ;;  %v2430_v39 = vadd.f32 %v6001_v58, %v2165_v15  ;;  %v2167_v25 = vadd.f32 %v6011_v35, %v5901_v11  ;;  %v2433_v37 = vadd.f32 %v6005_v60, %v2168_v6  ;;  %v6580_v60 = vld [vmem:[#allocation46_spill] sm:$0xff]  ;;  %v6586_v15 = vld [vmem:[#allocation48_spill] sm:$0xff] }
 0x1d7   : > { %v3092_v19 = vadd.f32 %v3091_v55, %v3061_v42  ;;  %2994 = vst [vmem:[%s6087_s10 + $0x48] sm:$0xff] %v2962_v10  ;;  %v3023_v23 = vadd.f32 %v3022_v17, %v2960_v46  ;;  %v2696_v50 = vadd.f32 %v4264_v9, %v2427_v5  ;;  %v2844_v53 = vpop.f32.mrf.mxu0  ;;  %v3064_v8 = vmul.f32 %v2962_v10, %v2962_v10  ;;  %v6579_v42 = vld [vmem:[#allocation9_spill] sm:$0xff]  ;;  %v6582_v9 = vld [vmem:[#allocation47_spill] sm:$0xff] }
 0x1d8   : > { %v2961_v12 = vadd.f32 %v2834_v33, %v2693_v47  ;;  %v2576_v0 = vpop.f32.mrf.mxu1  ;;  %v6578_v33 = vld [vmem:[#allocation12_spill] sm:$0xff]  ;;  %v2432_v55 = vadd.f32 %v6579_v42, %v2167_v25  ;;  %v6596_v42 = vld [vmem:[#allocation27_spill] sm:$0xff] }
 0x1d9   : > { %v3093_v24 = vadd.f32 %v3092_v19, %v3062_v31  ;;  %v2964_v1 = vadd.f32 %v4314_v41, %v2696_v50  ;;  %v2695_v52 = vadd.f32 %v2576_v0, %v2426_v14  ;;  %v4317_v22 = vpop.f32.mrf.mxu0  ;;  %v2170_v45 = vadd.f32 %v6578_v33, %v6577_v40  ;;  %v6583_v31 = vld [vmem:[#allocation20_spill] sm:$0xff] }
 0x1da   : > { %2993 = vst [vmem:[%s6087_s10 + $0x40] sm:$0xff] %v2961_v12  ;;  %v3024_v54 = vadd.f32 %v3023_v23, %v2961_v12  ;;  %v3063_v57 = vmul.f32 %v2961_v12, %v2961_v12  ;;  %v4267_v21 = vpop.f32.mrf.mxu1  ;;  %v2172_v19 = vadd.f32 %v6583_v31, %v6582_v9  ;;  %v6584_v12 = vld [vmem:[#allocation10_spill] sm:$0xff]  ;;  %v6597_v31 = vld [vmem:[#allocation32_spill] sm:$0xff] }
 0x1db   : > { %2996 = vst [vmem:[%s6087_s10 + $0x58] sm:$0xff] %v2964_v1  ;;  %v2963_v36 = vadd.f32 %v2844_v53, %v2695_v52  ;;  %v2698_v48 = vadd.f32 %v4267_v21, %v2429_v20  ;;  %v2854_v26 = vpop.f32.mrf.mxu0  ;;  %v3066_v18 = vmul.f32 %v2964_v1, %v2964_v1  ;;  %v2435_v0 = vadd.f32 %v6584_v12, %v2170_v45  ;;  %v6585_v21 = vld [vmem:[#allocation14_spill] sm:$0xff] }
 0x1dc   : > { %v3094_v56 = vadd.f32 %v3093_v24, %v3063_v57  ;;  %v3025_v13 = vadd.f32 %v3024_v54, %v2962_v10  ;;  %v2586_v63 = vpop.f32.mrf.mxu1  ;;  %v6581_v10 = vld [vmem:[#allocation16_spill] sm:$0xff] }
 0x1dd   : > { %2995 = vst [vmem:[%s6087_s10 + $0x50] sm:$0xff] %v2963_v36  ;;  %v3065_v34 = vmul.f32 %v2963_v36, %v2963_v36  ;;  %v2966_v3 = vadd.f32 %v4317_v22, %v2698_v48  ;;  %v2697_v29 = vadd.f32 %v2586_v63, %v2428_v7  ;;  %v4320_v4 = vpop.f32.mrf.mxu0  ;;  %v2169_v41 = vadd.f32 %v6581_v10, %v6580_v60 }
 0x1de   : > { %v3026_v16 = vadd.f32 %v3025_v13, %v2963_v36  ;;  %v3095_v61 = vadd.f32 %v3094_v56, %v3064_v8  ;;  %v4270_v44 = vpop.f32.mrf.mxu1  ;;  %v6587_v36 = vld [vmem:[#allocation24_spill] sm:$0xff]  ;;  %v6588_v56 = vld [vmem:[#allocation18_spill] sm:$0xff] }
 0x1df   : > { %2998 = vst [vmem:[%s6087_s10 + $0x68] sm:$0xff] %v2966_v3  ;;  %v2965_v51 = vadd.f32 %v2854_v26, %v2697_v29  ;;  %v2700_v49 = vadd.f32 %v4270_v44, %v2431_v38  ;;  %v2864_v46 = vpop.f32.mrf.mxu0  ;;  %v3068_v23 = vmul.f32 %v2966_v3, %v2966_v3  ;;  %v2434_v7 = vadd.f32 %v6585_v21, %v2169_v41  ;;  %v6589_v29 = vld [vmem:[#allocation49_spill] sm:$0xff] }
 0x1e0   : > { %v3096_v32 = vadd.f32 %v3095_v61, %v3065_v34  ;;  %v3027_v27 = vadd.f32 %v3026_v16, %v2964_v1  ;;  %v2596_v30 = vpop.f32.mrf.mxu1  ;;  %v2171_v48 = vadd.f32 %v6587_v36, %v6586_v15  ;;  %v2437_v13 = vadd.f32 %v6588_v56, %v2172_v19  ;;  %v6602_v56 = vld [vmem:[#allocation38_spill] sm:$0xff] }
 0x1e1   : > { %2997 = vst [vmem:[%s6087_s10 + $0x60] sm:$0xff] %v2965_v51  ;;  %v3067_v5 = vmul.f32 %v2965_v51, %v2965_v51  ;;  %v2968_v58 = vadd.f32 %v4320_v4, %v2700_v49  ;;  %v2699_v43 = vadd.f32 %v2596_v30, %v2430_v39  ;;  %v4323_v62 = vpop.f32.mrf.mxu0  ;;  %v6590_v4 = vld [vmem:[#allocation29_spill] sm:$0xff] }
 0x1e2   : > { %v3028_v11 = vadd.f32 %v3027_v27, %v2965_v51  ;;  %v3097_v35 = vadd.f32 %v3096_v32, %v3066_v18  ;;  %v4273_v17 = vpop.f32.mrf.mxu1  ;;  %v2174_v16 = vadd.f32 %v6590_v4, %v6589_v29  ;;  %v6592_v32 = vld [vmem:[#allocation50_spill] sm:$0xff] }
 0x1e3   : > { %3000 = vst [vmem:[%s6087_s10 + $0x78] sm:$0xff] %v2968_v58  ;;  %v2967_v14 = vadd.f32 %v2864_v46, %v2699_v43  ;;  %v2702_v59 = vadd.f32 %v4273_v17, %v2433_v37  ;;  %v2874_v47 = vpop.f32.mrf.mxu0  ;;  %v3070_v63 = vmul.f32 %v2968_v58, %v2968_v58  ;;  %v6591_v37 = vld [vmem:[#allocation22_spill] sm:$0xff] }
 0x1e4   : > { %v3098_v50 = vadd.f32 %v3097_v35, %v3067_v5  ;;  %v3029_v53 = vadd.f32 %v3028_v11, %v2966_v3  ;;  %v2606_v20 = vpop.f32.mrf.mxu1  ;;  %v2436_v18 = vadd.f32 %v6591_v37, %v2171_v48  ;;  %v6593_v27 = vld [vmem:[#allocation34_spill] sm:$0xff]  ;;  %v6594_v5 = vld [vmem:[#allocation51_spill] sm:$0xff] }
 0x1e5   : > { %2999 = vst [vmem:[%s6087_s10 + $0x70] sm:$0xff] %v2967_v14  ;;  %v3069_v28 = vmul.f32 %v2967_v14, %v2967_v14  ;;  %v2970_v24 = vadd.f32 %v4323_v62, %v2702_v59  ;;  %v2701_v1 = vadd.f32 %v2606_v20, %v2432_v55  ;;  %v4326_v52 = vpop.f32.mrf.mxu0  ;;  %v2173_v30 = vadd.f32 %v6593_v27, %v6592_v32 }
 0x1e6   : > { %v3030_v22 = vadd.f32 %v3029_v53, %v2967_v14  ;;  %v3099_v54 = vadd.f32 %v3098_v50, %v3068_v23  ;;  %v4276_v57 = vpop.f32.mrf.mxu1  ;;  %v2439_v55 = vadd.f32 %v6596_v42, %v2174_v16  ;;  %v6598_v23 = vld [vmem:[#allocation23_spill] sm:$0xff]  ;;  %v6605_v16 = vld [vmem:[#allocation33_spill] sm:$0xff] }
 0x1e7   : > { %3002 = vst [vmem:[%s6087_s10 + $0x88] sm:$0xff] %v2970_v24  ;;  %v2969_v26 = vadd.f32 %v2874_v47, %v2701_v1  ;;  %v2704_v6 = vadd.f32 %v4276_v57, %v2435_v0  ;;  %v2884_v8 = vpop.f32.mrf.mxu0  ;;  %v3072_v62 = vmul.f32 %v2970_v24, %v2970_v24  ;;  %v2438_v19 = vadd.f32 %v6597_v31, %v2173_v30  ;;  %v6599_v50 = vld [vmem:[#allocation15_spill] sm:$0xff]  ;;  %v6601_v57 = vld [vmem:[#allocation28_spill] sm:$0xff]  ;;  %v6611_v42 = vld [vmem:[#allocation17_spill] sm:$0xff] }
 0x1e8   : > { %v3100_v38 = vadd.f32 %v3099_v54, %v3069_v28  ;;  %v3031_v34 = vadd.f32 %v3030_v22, %v2968_v58  ;;  %v2616_v3 = vpop.f32.mrf.mxu1  ;;  %v6595_v58 = vld [vmem:[#allocation13_spill] sm:$0xff]  ;;  %v2175_v53 = vadd.f32 %v6599_v50, %v6598_v23  ;;  %v6600_v28 = vld [vmem:[#allocation36_spill] sm:$0xff]  ;;  %v2178_v21 = vadd.f32 %v6047_v2, %v6601_v57  ;;  %v6606_v2 = vld [vmem:[#allocation30_spill] sm:$0xff] }
 0x1e9   : > { %3001 = vst [vmem:[%s6087_s10 + $0x80] sm:$0xff] %v2969_v26  ;;  %v3071_v61 = vmul.f32 %v2969_v26, %v2969_v26  ;;  %v2972_v44 = vadd.f32 %v4326_v52, %v2704_v6  ;;  %v2703_v39 = vadd.f32 %v2616_v3, %v2434_v7  ;;  %v4329_v25 = vpop.f32.mrf.mxu0  ;;  %v2176_v43 = vadd.f32 %v6595_v58, %v6594_v5  ;;  %v6609_v58 = vld [vmem:[#allocation35_spill] sm:$0xff] }
 0x1ea   : > { %v3032_v51 = vadd.f32 %v3031_v34, %v2969_v26  ;;  %v3101_v49 = vadd.f32 %v3100_v38, %v3070_v63  ;;  %v4279_v46 = vpop.f32.mrf.mxu1  ;;  %v6603_v63 = vld [vmem:[#allocation31_spill] sm:$0xff]  ;;  %v6604_v38 = vld [vmem:[#allocation21_spill] sm:$0xff] }
 0x1eb   : > { %3004 = vst [vmem:[%s6087_s10 + $0x98] sm:$0xff] %v2972_v44  ;;  %v2971_v40 = vadd.f32 %v2884_v8, %v2703_v39  ;;  %v2706_v33 = vadd.f32 %v4279_v46, %v2437_v13  ;;  %v2894_v45 = vpop.f32.mrf.mxu0  ;;  %v3074_v1 = vmul.f32 %v2972_v44, %v2972_v44  ;;  %v2440_v13 = vadd.f32 %v6602_v56, %v2175_v53 }
 0x1ec   : > { %v3102_v11 = vadd.f32 %v3101_v49, %v3071_v61  ;;  %v3033_v35 = vadd.f32 %v3032_v51, %v2970_v24  ;;  %v2626_v17 = vpop.f32.mrf.mxu1  ;;  %v2441_v24 = vadd.f32 %v6600_v28, %v2176_v43  ;;  %v2177_v34 = vadd.f32 %v6604_v38, %v6603_v63  ;;  %v6607_v49 = vld [vmem:[#allocation25_spill] sm:$0xff] }
 0x1ed   : > { %3003 = vst [vmem:[%s6087_s10 + $0x90] sm:$0xff] %v2971_v40  ;;  %v3073_v60 = vmul.f32 %v2971_v40, %v2971_v40  ;;  %v2974_v10 = vadd.f32 %v4329_v25, %v2706_v33  ;;  %v2705_v41 = vadd.f32 %v2626_v17, %v2436_v18  ;;  %v4332_v14 = vpop.f32.mrf.mxu0  ;;  %v2180_v61 = vadd.f32 %v6606_v2, %v6605_v16  ;;  %v6610_v43 = vld [vmem:[#allocation41_spill] sm:$0xff] }
 0x1ee   : > { %v3034_v59 = vadd.f32 %v3033_v35, %v2971_v40  ;;  %v3103_v47 = vadd.f32 %v3102_v11, %v3072_v62  ;;  %v4282_v9 = vpop.f32.mrf.mxu1  ;;  %v2443_v46 = vadd.f32 %v6607_v49, %v2178_v21  ;;  %v2179_v62 = vadd.f32 %v6610_v43, %v6609_v58 }
 0x1ef   : > { %3006 = vst [vmem:[%s6087_s10 + $0xa8] sm:$0xff] %v2974_v10  ;;  %v2973_v20 = vadd.f32 %v2894_v45, %v2705_v41  ;;  %v2708_v12 = vadd.f32 %v4282_v9, %v2439_v55  ;;  %v2904_v0 = vpop.f32.mrf.mxu0  ;;  %v6608_v45 = vld [vmem:[#allocation40_spill] sm:$0xff]  ;;  %v2445_v55 = vadd.f32 %v6611_v42, %v2180_v61 }
 0x1f0   : > { %v3104_v52 = vadd.f32 %v3103_v47, %v3073_v60  ;;  %v3035_v22 = vadd.f32 %v3034_v59, %v2972_v44  ;;  %v2636_v54 = vpop.f32.mrf.mxu1  ;;  %v3076_v44 = vmul.f32 %v2974_v10, %v2974_v10  ;;  %v2442_v5 = vadd.f32 %v6608_v45, %v2177_v34  ;;  %v6612_v59 = vld [vmem:[#allocation37_spill] sm:$0xff]  ;;  %v6613_v47 = vld [vmem:[#allocation26_spill] sm:$0xff] }
 0x1f1   : > { %3005 = vst [vmem:[%s6087_s10 + $0xa0] sm:$0xff] %v2973_v20  ;;  %v3075_v7 = vmul.f32 %v2973_v20, %v2973_v20  ;;  %v2976_v15 = vadd.f32 %v4332_v14, %v2708_v12  ;;  %v2707_v36 = vadd.f32 %v2636_v54, %v2438_v19  ;;  %v4335_v48 = vpop.f32.mrf.mxu0  ;;  %v2182_v9 = vadd.f32 %v6613_v47, %v6612_v59 }
 0x1f2   : > { %v3036_v26 = vadd.f32 %v3035_v22, %v2973_v20  ;;  %v3105_v6 = vadd.f32 %v3104_v52, %v3074_v1  ;;  %v4285_v8 = vpop.f32.mrf.mxu1  ;;  %v6616_v1 = vld [vmem:[#allocation43_spill] sm:$0xff] }
 0x1f3   : > { %3008 = vst [vmem:[%s6087_s10 + $0xb8] sm:$0xff] %v2976_v15  ;;  %v2975_v3 = vadd.f32 %v2904_v0, %v2707_v36  ;;  %v2710_v29 = vadd.f32 %v4285_v8, %v2441_v24  ;;  %v2914_v4 = vpop.f32.mrf.mxu0  ;;  %v3078_v60 = vmul.f32 %v2976_v15, %v2976_v15  ;;  %v6614_v0 = vld [vmem:[#allocation19_spill] sm:$0xff] }
 0x1f4   : > { %v3106_v39 = vadd.f32 %v3105_v6, %v3075_v7  ;;  %v3037_v25 = vadd.f32 %v3036_v26, %v2974_v10  ;;  %v2646_v51 = vpop.f32.mrf.mxu1  ;;  %v2444_v28 = vadd.f32 %v6614_v0, %v2179_v62  ;;  %v6615_v24 = vld [vmem:[#allocation39_spill] sm:$0xff] }
 0x1f5   : > { %3007 = vst [vmem:[%s6087_s10 + $0xb0] sm:$0xff] %v2975_v3  ;;  %v3077_v37 = vmul.f32 %v2975_v3, %v2975_v3  ;;  %v2978_v18 = vadd.f32 %v4335_v48, %v2710_v29  ;;  %v2709_v32 = vadd.f32 %v2646_v51, %v2440_v13  ;;  %v4338_v27 = vpop.f32.mrf.mxu0  ;;  %v2181_v52 = vadd.f32 %v6616_v1, %v6615_v24  ;;  %v6617_v48 = vld [vmem:[#allocation11_spill] sm:$0xff] }
 0x1f6   : > { %v3038_v30 = vadd.f32 %v3037_v25, %v2975_v3  ;;  %v3107_v40 = vadd.f32 %v3106_v39, %v3076_v44  ;;  %v4288_v33 = vpop.f32.mrf.mxu1  ;;  %v2447_v26 = vadd.f32 %v6617_v48, %v2182_v9  ;;  %v6618_v3 = vld [vmem:[#allocation42_spill] sm:$0xff] }
 0x1f7   : > { %3010 = vst [vmem:[%s6087_s10 + $0xc8] sm:$0xff] %v2978_v18  ;;  %v2977_v11 = vadd.f32 %v2914_v4, %v2709_v32  ;;  %v2712_v35 = vadd.f32 %v4288_v33, %v2443_v46  ;;  %v2924_v17 = vpop.f32.mrf.mxu0  ;;  %v3080_v21 = vmul.f32 %v2978_v18, %v2978_v18  ;;  %v2446_v29 = vadd.f32 %v6618_v3, %v2181_v52 }
 0x1f8   : > { %v3108_v10 = vadd.f32 %v3107_v40, %v3077_v37  ;;  %v3039_v41 = vadd.f32 %v3038_v30, %v2976_v15  ;;  %v2656_v14 = vpop.f32.mrf.mxu1 }
 0x1f9   : > { %3009 = vst [vmem:[%s6087_s10 + $0xc0] sm:$0xff] %v2977_v11  ;;  %v3079_v31 = vmul.f32 %v2977_v11, %v2977_v11  ;;  %v2980_v19 = vadd.f32 %v4338_v27, %v2712_v35  ;;  %v2711_v23 = vadd.f32 %v2656_v14, %v2442_v5  ;;  %v4341_v50 = vpop.f32.mrf.mxu0 }
 0x1fa   : > { %v3040_v53 = vadd.f32 %v3039_v41, %v2977_v11  ;;  %v3109_v20 = vadd.f32 %v3108_v10, %v3078_v60  ;;  %v4291_v12 = vpop.f32.mrf.mxu1 }
 0x1fb   : > { %3012 = vst [vmem:[%s6087_s10 + $0xd8] sm:$0xff] %v2980_v19  ;;  %v2979_v22 = vadd.f32 %v2924_v17, %v2711_v23  ;;  %v2714_v54 = vadd.f32 %v4291_v12, %v2445_v55  ;;  %v2934_v57 = vpop.f32.mrf.mxu0  ;;  %v3082_v2 = vmul.f32 %v2980_v19, %v2980_v19 }
 0x1fc   : > { %v3110_v7 = vadd.f32 %v3109_v20, %v3079_v31  ;;  %v3041_v15 = vadd.f32 %v3040_v53, %v2978_v18  ;;  %v2666_v36 = vpop.f32.mrf.mxu1 }
 0x1fd   : > { %3011 = vst [vmem:[%s6087_s10 + $0xd0] sm:$0xff] %v2979_v22  ;;  %v3081_v6 = vmul.f32 %v2979_v22, %v2979_v22  ;;  %v2982_v8 = vadd.f32 %v4341_v50, %v2714_v54  ;;  %v2713_v56 = vadd.f32 %v2666_v36, %v2444_v28  ;;  %v4344_v34 = vpop.f32.mrf.mxu0 }
 0x1fe   : > { %v3042_v13 = vadd.f32 %v3041_v15, %v2979_v22  ;;  %v3111_v63 = vadd.f32 %v3110_v7, %v3080_v21  ;;  %v4294_v38 = vpop.f32.mrf.mxu1 }
 0x1ff   : > { %3014 = vst [vmem:[%s6087_s10 + $0xe8] sm:$0xff] %v2982_v8  ;;  %v2981_v4 = vadd.f32 %v2934_v57, %v2713_v56  ;;  %v2716_v16 = vadd.f32 %v4294_v38, %v2447_v26  ;;  %v2944_v18 = vpop.f32.mrf.mxu0  ;;  %v3084_v27 = vmul.f32 %v2982_v8, %v2982_v8 }
 0x200   : > { %v3112_v61 = vadd.f32 %v3111_v63, %v3081_v6  ;;  %v3043_v44 = vadd.f32 %v3042_v13, %v2980_v19  ;;  %v2676_v39 = vpop.f32.mrf.mxu1 }
 0x201   : > { %3013 = vst [vmem:[%s6087_s10 + $0xe0] sm:$0xff] %v2981_v4  ;;  %v3083_v25 = vmul.f32 %v2981_v4, %v2981_v4  ;;  %v2984_v51 = vadd.f32 %v4344_v34, %v2716_v16  ;;  %v2715_v49 = vadd.f32 %v2676_v39, %v2446_v29 }
 0x202   : > { %v3044_v46 = vadd.f32 %v3043_v44, %v2981_v4  ;;  %v3113_v37 = vadd.f32 %v3112_v61, %v3082_v2 }
 0x203   : > { %3016 = vst [vmem:[%s6087_s10 + $0xf8] sm:$0xff] %v2984_v51  ;;  %v2983_v32 = vadd.f32 %v2944_v18, %v2715_v49 }
 0x204   : > { %v3114_v30 = vadd.f32 %v3113_v37, %v3083_v25  ;;  %v3045_v40 = vadd.f32 %v3044_v46, %v2982_v8 }
 0x205   : > { %3015 = vst [vmem:[%s6087_s10 + $0xf0] sm:$0xff] %v2983_v32  ;;  %v3085_v33 = vmul.f32 %v2983_v32, %v2983_v32 }
 0x206   : > { %v3046_v45 = vadd.f32 %v3045_v40, %v2983_v32  ;;  %v3115_v5 = vadd.f32 %v3114_v30, %v3084_v27 }
 0x207   : > { %4412 = shalt.err (!%p4409_p3)
}
 0x208   : > { %s4413_s5 = scalar_lea.hbm %s6204_s22, 4096  ;;  %s4417_s9 = scalar_lea.hbm %s6320_s2, 8192 }
 0x209   : > { %p4414_p4 = scmp.ne.s32.totalorder %s6204_s22, %s4413_s5  ;;  %p4418_p9 = scmp.lt.s32.totalorder %s6204_s22, %s6320_s2 }
 0x20a   : > { %p4419_p10 = scmp.lt.s32.totalorder %s4417_s9, %s4413_s5 }
 0x20b   : > { %p4415_p7 = pnand %p4414_p4, %p4587_p5 }
 0x20c   : > { %p4420_p11 = por %p4419_p10, %p4418_p9 }
 0x20d   : > { %p4416_p8 = pneg %p4415_p7 }
 0x20f   : > { %p4421_p12 = pnand %p4420_p11, %p4416_p8 }
 0x211   : > { %4424 = shalt.err (!%p4421_p12)
}
 0x212   : > { %s4518_s13 = smov 128   ;;  %s4519_s14 = smov 8   ;;  %v3086_v58 = vmul.f32 %v2984_v51, %v2984_v51  ;;  %v3047_v43 = vadd.f32 %v3046_v45, %v2984_v51  ;;  %v3116_v62 = vadd.f32 %v3115_v5, %v3085_v33 }
 0x213   : > { %4348 = dma.vmem_to_hbm [thread:$0]  (%p4587_p5), %s6206_s12, 4096, %s6204_s22, %s3126_s23, %s4518_s13, %s4518_s13, %s4519_s14  }
 0x214   : > { %v3048_v11 = vrot.slane %v3047_v43, 4  ;;  %v3117_v35 = vadd.f32 %v3116_v62, %v3086_v58  ;;  %s3130_s27 = sand.u32 1, %s4568_s19   ;;  %s3593_s28 = sshll.u32 %s4568_s19, 4 }
 0x215   : > { %s200_s29 = scalar_lea.vmem [#allocation4], %s6067_s8  ;;  %s206_s12 = scalar_lea.vmem [#allocation6], %s6067_s8 }
 0x216   : > { %v3049_v17 = vadd.f32 %v3048_v11, %v3047_v43  ;;  %v3118_v42 = vrot.slane %v3117_v35, 4  ;;  %s3163_s30 = sshll.u32 %s200_s29, 4  ;;  %s3176_s22 = sshll.u32 %s206_s12, 4  ;;  %s6244_s30 = int_to_ptr.vmem [resolvable:$true] %s3163_s30  ;;  %s6251_s22 = int_to_ptr.vmem [resolvable:$true] %s3176_s22 }
 0x217   : > { %s6242_s6 = scalar_lea.hbm %s6321_s3, %s3593_s28  ;;  %s6249_s9 = scalar_lea.hbm %s6322_s4, %s3593_s28 }
 0x218   : > { %v3119_v55 = vadd.f32 %v3118_v42, %v3117_v35  ;;  %v3050_v60 = vrot.slane %v3049_v17, 2  ;;  %s6253_s10 = scalar_lea.sflag [#allocation5], %s3130_s27  ;;  %s4425_s11 = scalar_lea.vmem %s6244_s30, 16 }
 0x219   : > { %p4426_p13 = scmp.ne.s32.totalorder %s6244_s30, %s4425_s11  ;;  %s4520_s13 = smov [#allocation4]  }
 0x21a   : > { %v3051_v10 = vadd.f32 %v3050_v60, %v3049_v17  ;;  %v3120_v41 = vrot.slane %v3119_v55, 2  ;;  %s4429_s14 = sshll.u32 %s4520_s13, 4  ;;  %s4430_s14 = int_to_ptr.vmem [resolvable:$false] %s4429_s14 }
 0x21b   : > { %p4427_p0 = pnand %p4426_p13, %p4587_p5  ;;  %s4431_s23 = scalar_lea.vmem %s4430_s14, 32 }
 0x21c   : > { %v3052_v14 = vrot.slane %v3051_v10, 1  ;;  %v3121_v59 = vadd.f32 %v3120_v41, %v3119_v55  ;;  %p4432_p2 = scmp.lt.s32.totalorder %s6244_s30, %s4430_s14  ;;  %p4433_p3 = scmp.lt.s32.totalorder %s4431_s23, %s4425_s11 }
 0x21d   : > { %p4428_p1 = pneg %p4427_p0 }
 0x21e   : > { %v3053_v47 = vadd.f32 %v3052_v14, %v3051_v10  ;;  %v3122_v9 = vrot.slane %v3121_v59, 1  ;;  %p4434_p4 = por %p4433_p3, %p4432_p2 }
 0x220   : > { %3054 = vst [vmem:[%s200_s29] sm:$0x1] %v3053_v47  ;;  %v3123_v31 = vadd.f32 %v3122_v9, %v3121_v59  ;;  %p4435_p7 = pnand %p4434_p4, %p4428_p1 }
 0x222   : > { %4438 = shalt.err (!%p4435_p7)
}
 0x223   : > { %s4439_s27 = scalar_lea.hbm %s6242_s6, 16  ;;  %s4443_s5 = scalar_lea.hbm %s6321_s3, 32 }
 0x224   : > { %p4440_p8 = scmp.ne.s32.totalorder %s6242_s6, %s4439_s27  ;;  %p4444_p11 = scmp.lt.s32.totalorder %s6242_s6, %s6321_s3 }
 0x225   : > { %p4445_p12 = scmp.lt.s32.totalorder %s4443_s5, %s4439_s27 }
 0x226   : > { %p4441_p9 = pnand %p4440_p8, %p4587_p5 }
 0x227   : > { %p4446_p13 = por %p4445_p12, %p4444_p11 }
 0x228   : > { %p4442_p10 = pneg %p4441_p9 }
 0x22a   : > { %p4447_p0 = pnand %p4446_p13, %p4442_p10 }
 0x22c   : > { %4450 = shalt.err (!%p4447_p0)
}
 0x22d   : > { %4349 = dma.vmem_to_hbm [thread:$0]  (%p4587_p5), %s6244_s30, 16, %s6242_s6, %s6253_s10   ;;  %3124 = vst [vmem:[%s206_s12] sm:$0x1] %v3123_v31 }
 0x22e   : > { %s4451_s11 = scalar_lea.vmem %s6251_s22, 16  ;;  %s4521_s13 = smov [#allocation6]  }
 0x22f   : > { %p4452_p1 = scmp.ne.s32.totalorder %s6251_s22, %s4451_s11  ;;  %s4455_s14 = sshll.u32 %s4521_s13, 4  ;;  %s4456_s14 = int_to_ptr.vmem [resolvable:$false] %s4455_s14 }
 0x230   : > { %s4457_s23 = scalar_lea.vmem %s4456_s14, 32  ;;  %p4458_p4 = scmp.lt.s32.totalorder %s6251_s22, %s4456_s14 }
 0x231   : > { %p4453_p2 = pnand %p4452_p1, %p4587_p5  ;;  %p4459_p7 = scmp.lt.s32.totalorder %s4457_s23, %s4451_s11 }
 0x233   : > { %p4454_p3 = pneg %p4453_p2  ;;  %p4460_p8 = por %p4459_p7, %p4458_p4 }
 0x235   : > { %p4461_p9 = pnand %p4460_p8, %p4454_p3 }
 0x237   : > { %4464 = shalt.err (!%p4461_p9)
}
 0x238   : > { %s4465_s8 = scalar_lea.hbm %s6249_s9, 16  ;;  %s4469_s6 = scalar_lea.hbm %s6322_s4, 32 }
 0x239   : > { %p4466_p10 = scmp.ne.s32.totalorder %s6249_s9, %s4465_s8  ;;  %p4470_p13 = scmp.lt.s32.totalorder %s6249_s9, %s6322_s4 }
 0x23a   : > { %p4471_p0 = scmp.lt.s32.totalorder %s4469_s6, %s4465_s8 }
 0x23b   : > { %p4467_p11 = pnand %p4466_p10, %p4587_p5 }
 0x23c   : > { %p4472_p1 = por %p4471_p0, %p4470_p13 }
 0x23d   : > { %p4468_p12 = pneg %p4467_p11 }
 0x23f   : > { %p4473_p2 = pnand %p4472_p1, %p4468_p12 }
 0x241   : > { %4476 = shalt.err (!%p4473_p2)
}
 0x242   : > { %4350 = dma.vmem_to_hbm [thread:$0]  (%p4587_p5), %s6251_s22, 16, %s6249_s9, %s6253_s10  }
 0x243 PF: > { %p4364_p3 = scmp.ge.s32.totalorder %s4515_s18, 2  ;;  %s3188_s29 = sand.u32 1, %s4503_s15  }
 0x244   : > { %s3189_s5 = scalar_lea.sflag [#allocation3], %s3188_s29 }
 0x245   : > { %p4355_p4 = pnand %p4364_p3, %p4591_p6 }
 0x247   : > { %p4356_p7 = pneg %p4355_p4 }
 0x249   : > { %4494 = dma.done.wait (%p4356_p7), %s3189_s5, 4096  }
 0x24a   : > { %4496 = vsyncadd (%p4356_p7), %s3189_s5, 4294963200  ;;  %s3197_s19 = sand.u32 1, %s3288_s20  }
 0x24b   : > { %s3198_s25 = scalar_lea.sflag [#allocation5], %s3197_s19 }
 0x24c   : > { %4498 = dma.done.wait (%p4356_p7), %s3198_s25, 32  }
 0x24d   : > { %4500 = vsyncadd (%p4356_p7), %s3198_s25, 4294967264  ;;  %p18_p5 = scmp.ge.s32.totalorder %s4572_s21, 4   ;;  %s6619_s15 = smov %s4507_s16 }
 0x24e   : > { %s6620_s16 = smov %s4511_s17  ;;  %s6621_s17 = smov %s4585_s24 }
 0x24f   : > { %s6622_s18 = smov %s4572_s21  ;;  %20 = sbr.rel (!%p18_p5) target bundleno = 5 (0x5), region = 103 }
 0x254   :  { %3210 = vsyncpa [#allocation3], 1 }
 0x255   :  { %3212 = vsyncpa [#allocation3 + $0x1], 1 }
 0x256   :  { %3213 = vsyncpa [#allocation5], 1 }
 0x257   :  { %3215 = vsyncpa [#allocation5 + $0x1], 1 }

</bundles_post_ra>
